<compile_context>
chip_gen: v5e
topology: v5e:2x2
jax: 0.10.0
libtpu: 0.0.40
codegen_flags: <defaults>
</compile_context>

<pallas_src>
import functools

import jax
import jax.numpy as jnp
import numpy as np
from jax.experimental import pallas as pl
from jax.experimental.pallas import tpu as pltpu

# ---- cmd_args equivalents (small, deterministic) ----
FEAT_DIM   = 16   # cmd_args.feat_dim
LATENT_DIM = 32   # cmd_args.latent_dim
OUT_DIM    = 32   # cmd_args.out_dim  (> 0 -> out_params branch is used)
HIDDEN     = 32   # cmd_args.hidden
NUM_CLASS  = 4    # cmd_args.num_class
MAX_LV     = 3    # cmd_args.max_lv
# gm == 'mean_field' -> EmbedMeanField; num_edge_feats == 0 so the edge branch is absent.

CLASS_PAD = 128     # lane-dense logits slab width
NEG_INF   = -1e30   # padded-class bias (finite so 0*pad stays 0, exp underflows to 0)


def _round_up(x, m):
    return (x + m - 1) // m * m


def _vmem_capacity_bytes():
    try:
        return int(pltpu.get_tpu_info().vmem_capacity_bytes)
    except Exception:
        return 64 * 1024 * 1024          # conservative default (v7x per-TC VMEM)


_VMEM_BYTES = _vmem_capacity_bytes()
# Scoped-VMEM limit for the fused call: well above the 16/32 MiB defaults, below physical.
_FUSED_VMEM_LIMIT = max(32 * 1024 * 1024,
                        min(int(0.90 * _VMEM_BYTES), 100 * 1024 * 1024))
# How much of VMEM the fast path is allowed to plan for (resident adjacency etc.).
_FAST_PATH_BUDGET = max(24 * 1024 * 1024, int(0.70 * _VMEM_BYTES))
# Fallback tiles need only a few MiB, but set the limit explicitly (v5e default is 16 MiB).
_FALLBACK_VMEM_LIMIT = 32 * 1024 * 1024


def _fast_path_ok(n_pad, b_pad):
    """True if the whole int8 adjacency + f32 node state fit comfortably in VMEM."""
    need = n_pad * n_pad                       # resident int8 adjacency (single copy)
    need += 2 * n_pad * LATENT_DIM * 4         # msg + cur f32 scratch
    need += 3 * 256 * n_pad                    # bf16 row-tile / y / relu_fp transients
    need += 2 * n_pad * 512                    # tags (n,1) int32 lane-padded, dbl-buffered
    need += 2 * b_pad * n_pad * 4              # pooling matrix, dbl-buffered
    need += 2 * 1024 * 1024                    # weights, logits slab, misc headroom
    return need <= _FAST_PATH_BUDGET


# ---------------------------------------------------------------------------
# Shared readout math (used by both the fused kernel and the fallback readout)
# ---------------------------------------------------------------------------
def _softmax_loss_acc(logits, y1h, num_real):
    """log_softmax over the lane-dense padded class slab + nll_loss + accuracy."""
    f32 = jnp.float32
    m = jnp.max(logits, axis=1, keepdims=True)
    z = logits - m
    lse = jnp.log(jnp.sum(jnp.exp(z), axis=1, keepdims=True))
    logp = z - lse
    inv_b = 1.0 / float(num_real)
    loss = -jnp.sum(y1h * logp) * inv_b

    # First-index argmax (matches torch argmax tie-breaking).
    bp, cp = logp.shape
    col = jax.lax.broadcasted_iota(jnp.int32, (bp, cp), 1)
    big = jnp.int32(cp + 1)
    row_max = jnp.max(logp, axis=1, keepdims=True)
    pred = jnp.min(jnp.where(logp >= row_max, col, big), axis=1, keepdims=True)
    lab = jnp.min(jnp.where(y1h > 0.5, col, big), axis=1, keepdims=True)
    correct = (pred == lab).astype(f32)      # padded batch rows: lab == big -> 0
    acc = jnp.sum(correct) * inv_b
    return logp, loss, acc


# ---------------------------------------------------------------------------
# FAST PATH: single fused kernel, adjacency VMEM-resident (read from HBM once)
# ---------------------------------------------------------------------------
def fused_kernel(tags_ref, subg_ref, y1h_ref,
                 wn2l_ref, bn2l_ref, wconv_ref, bconv_ref,
                 wout_ref, bout_ref, w1_ref, b1_ref, w2_ref, b2_ref,
                 adj_hbm_ref,
                 logits_ref, loss_ref, accuracy_ref,
                 adj_vmem, msg_ref, cur_ref, dma_sem,
                 *, num_real, row_tile):
    f32 = jnp.float32
    n_pad = adj_vmem.shape[0]

    # Single HBM read of the int8 adjacency; overlapped with the (tiny) init matmul.
    adj_cp = pltpu.make_async_copy(adj_hbm_ref, adj_vmem, dma_sem.at[0])
    adj_cp.start()

    # init: input_message = onehot(tags) @ W_n2l + b ; cur0 = relu(input_message)
    tags = tags_ref[...]                                                     # (N, 1) int32
    one_hot = (tags == jax.lax.broadcasted_iota(
        jnp.int32, (n_pad, FEAT_DIM), 1)).astype(f32)                        # in-register
    msg = jnp.dot(one_hot, wn2l_ref[...], preferred_element_type=f32) + bn2l_ref[...]
    msg_ref[...] = msg
    cur_ref[...] = jnp.maximum(msg, 0.0)

    adj_cp.wait()

    wconv = wconv_ref[...]
    bconv = bconv_ref[...]
    n_tiles = n_pad // row_tile

    # MAX_LV rounds of: cur = relu(A @ (cur @ W_conv) + b_conv + input_message)
    # W_conv hoisted by associativity: one (N,32)@(32,32) per level, not per row tile.
    for _ in range(MAX_LV):
        y16 = jnp.dot(cur_ref[...], wconv,
                      preferred_element_type=f32).astype(jnp.bfloat16)       # (N, 32)

        def row_step(r, carry, y16=y16):
            row = pl.multiple_of(r * row_tile, row_tile)
            a_t = adj_vmem[pl.ds(row, row_tile), :].astype(jnp.bfloat16)     # int8->bf16 exact
            ay = jnp.dot(a_t, y16, preferred_element_type=f32)               # (T, 32)
            cur_ref[pl.ds(row, row_tile), :] = jnp.maximum(
                ay + bconv + msg_ref[pl.ds(row, row_tile), :], 0.0)
            return carry

        jax.lax.fori_loop(0, n_tiles, row_step, 0)

    # Readout + MLP head + log_softmax/loss/accuracy, all in the same call.
    relu_fp = jnp.maximum(
        jnp.dot(cur_ref[...], wout_ref[...], preferred_element_type=f32) + bout_ref[...],
        0.0)                                                                 # (N, D)
    embed = jnp.maximum(
        jnp.dot(subg_ref[...], relu_fp, preferred_element_type=f32), 0.0)    # (Bp, D)
    h1 = jnp.maximum(
        jnp.dot(embed, w1_ref[...], preferred_element_type=f32) + b1_ref[...], 0.0)
    logits = jnp.dot(h1, w2_ref[...], preferred_element_type=f32) + b2_ref[...]

    logp, loss, acc = _softmax_loss_acc(logits, y1h_ref[...], num_real)
    logits_ref[...] = logp
    loss_ref[0, 0] = loss
    accuracy_ref[0, 0] = acc


def _fused_call(tags_pad, subg_pad, y1h_pad, adj_i8,
                wn2l, bn2l, wconv, bconv, wout, bout, w1, b1, w2p, b2p,
                *, num_real):
    n_pad = adj_i8.shape[0]
    b_pad = subg_pad.shape[0]
    row_tile = 256 if n_pad % 256 == 0 else 128
    L, D = LATENT_DIM, OUT_DIM
    kernel = functools.partial(fused_kernel, num_real=num_real, row_tile=row_tile)

    def const(shape):
        return pl.BlockSpec(shape, lambda i: (0, 0))

    return pl.pallas_call(
        kernel,
        out_shape=(jax.ShapeDtypeStruct((b_pad, CLASS_PAD), jnp.float32),
                   jax.ShapeDtypeStruct((1, 1), jnp.float32),
                   jax.ShapeDtypeStruct((1, 1), jnp.float32)),
        grid_spec=pltpu.PrefetchScalarGridSpec(
            num_scalar_prefetch=0, grid=(1,),
            in_specs=[
                const((n_pad, 1)),                                  # node tags
                const((b_pad, n_pad)),                              # pooling matrix
                const((b_pad, CLASS_PAD)),                          # labels one-hot
                const((FEAT_DIM, L)), const((1, L)),                # W_n2l, b
                const((L, L)), const((1, L)),                       # W_conv, b
                const((L, D)), const((1, D)),                       # W_out, b
                const((D, HIDDEN)), const((1, HIDDEN)),             # W1, b1
                const((HIDDEN, CLASS_PAD)), const((1, CLASS_PAD)),  # W2, b2 (class padded)
                pl.BlockSpec(memory_space=pl.ANY),                  # int8 adjacency (HBM)
            ],
            out_specs=(
                const((b_pad, CLASS_PAD)),
                pl.BlockSpec((1, 1), lambda i: (0, 0),
                             memory_space=pltpu.MemorySpace.SMEM),
                pl.BlockSpec((1, 1), lambda i: (0, 0),
                             memory_space=pltpu.MemorySpace.SMEM),
            ),
            scratch_shapes=[
                pltpu.VMEM((n_pad, n_pad), jnp.int8),   # resident adjacency (single copy)
                pltpu.VMEM((n_pad, L), jnp.float32),    # input_message
                pltpu.VMEM((n_pad, L), jnp.float32),    # cur
                pltpu.SemaphoreType.DMA((1,)),
            ]),
        compiler_params=pltpu.CompilerParams(
            dimension_semantics=("arbitrary",),
            vmem_limit_bytes=_FUSED_VMEM_LIMIT),
    )(tags_pad, subg_pad, y1h_pad, wn2l, bn2l, wconv, bconv,
      wout, bout, w1, b1, w2p, b2p, adj_i8)


# ---------------------------------------------------------------------------
# FALLBACK (large graphs): tiled, pipelined multi-call path
# ---------------------------------------------------------------------------
def init_kernel(tags_ref, wn2l_ref, bn2l_ref, msg_ref, cur_ref):
    f32 = jnp.float32
    tags = tags_ref[...]                                             # (T, 1) int32, -1 = pad
    tile_n = tags.shape[0]
    one_hot = (tags == jax.lax.broadcasted_iota(
        jnp.int32, (tile_n, FEAT_DIM), 1)).astype(f32)
    msg = jnp.dot(one_hot, wn2l_ref[...], preferred_element_type=f32) + bn2l_ref[...]
    msg_ref[...] = msg
    cur_ref[...] = jnp.maximum(msg, 0.0)                             # f32 node state


def propagate_kernel(adj_ref, cur_ref, msg_ref, wconv_ref, bconv_ref,
                     cur_out_ref, acc_ref):
    f32 = jnp.float32
    k = pl.program_id(1)

    @pl.when(k == 0)
    def _():
        acc_ref[...] = jnp.zeros_like(acc_ref)

    # int8 adjacency tile -> bf16 in-kernel (exact for 0/1); f32 cur -> bf16 MXU operand.
    a_bf16 = adj_ref[...].astype(jnp.bfloat16)
    c_bf16 = cur_ref[...].astype(jnp.bfloat16)
    acc_ref[...] += jnp.dot(a_bf16, c_bf16, preferred_element_type=f32)

    @pl.when(k == pl.num_programs(1) - 1)
    def _():
        node_linear = (jnp.dot(acc_ref[...], wconv_ref[...],
                               preferred_element_type=f32) + bconv_ref[...])
        cur_out_ref[...] = jnp.maximum(node_linear + msg_ref[...], 0.0)


def readout_kernel(cur_ref, subg_ref, y1h_ref,
                   wout_ref, bout_ref, w1_ref, b1_ref, w2_ref, b2_ref,
                   logits_ref, loss_ref, accuracy_ref, embed_acc_ref, *, num_real):
    f32 = jnp.float32
    i = pl.program_id(0)

    @pl.when(i == 0)
    def _():
        embed_acc_ref[...] = jnp.zeros_like(embed_acc_ref)

    relu_fp = jnp.maximum(
        jnp.dot(cur_ref[...], wout_ref[...], preferred_element_type=f32)
        + bout_ref[...], 0.0)                                        # (T, D)
    embed_acc_ref[...] += jnp.dot(subg_ref[...], relu_fp,
                                  preferred_element_type=f32)        # (Bp, D)

    @pl.when(i == pl.num_programs(0) - 1)
    def _():
        embed = jnp.maximum(embed_acc_ref[...], 0.0)
        h1 = jnp.maximum(jnp.dot(embed, w1_ref[...],
                                 preferred_element_type=f32) + b1_ref[...], 0.0)
        logits = jnp.dot(h1, w2_ref[...],
                         preferred_element_type=f32) + b2_ref[...]   # (Bp, 128)
        logp, loss, acc = _softmax_loss_acc(logits, y1h_ref[...], num_real)
        logits_ref[...] = logp
        loss_ref[0, 0] = loss
        accuracy_ref[0, 0] = acc


def _init_call(tags_pad, wn2l, bn2l, *, tile_n):
    n_pad = tags_pad.shape[0]
    nt = n_pad // tile_n
    return pl.pallas_call(
        init_kernel,
        out_shape=(jax.ShapeDtypeStruct((n_pad, LATENT_DIM), jnp.float32),
                   jax.ShapeDtypeStruct((n_pad, LATENT_DIM), jnp.float32)),
        grid_spec=pltpu.PrefetchScalarGridSpec(
            num_scalar_prefetch=0, grid=(nt,),
            in_specs=[
                pl.BlockSpec((tile_n, 1), lambda i: (i, 0)),
                pl.BlockSpec((FEAT_DIM, LATENT_DIM), lambda i: (0, 0)),
                pl.BlockSpec((1, LATENT_DIM), lambda i: (0, 0)),
            ],
            out_specs=(pl.BlockSpec((tile_n, LATENT_DIM), lambda i: (i, 0)),
                       pl.BlockSpec((tile_n, LATENT_DIM), lambda i: (i, 0))),
            scratch_shapes=()),
        compiler_params=pltpu.CompilerParams(
            dimension_semantics=("parallel",),
            vmem_limit_bytes=_FALLBACK_VMEM_LIMIT),
    )(tags_pad, wn2l, bn2l)


def _propagate_call(adj_i8, cur, msg, wconv, bconv, *, tile_n, tile_k):
    n_pad = adj_i8.shape[0]
    nt, kt = n_pad // tile_n, n_pad // tile_k
    L = LATENT_DIM
    return pl.pallas_call(
        propagate_kernel,
        out_shape=jax.ShapeDtypeStruct((n_pad, L), jnp.float32),
        grid_spec=pltpu.PrefetchScalarGridSpec(
            num_scalar_prefetch=0, grid=(nt, kt),
            in_specs=[
                pl.BlockSpec((tile_n, tile_k), lambda i, k: (i, k)),  # int8 adjacency tile
                pl.BlockSpec((tile_k, L), lambda i, k: (k, 0)),       # cur column tile (f32)
                pl.BlockSpec((tile_n, L), lambda i, k: (i, 0)),       # input_message row tile
                pl.BlockSpec((L, L), lambda i, k: (0, 0)),            # W_conv (resident)
                pl.BlockSpec((1, L), lambda i, k: (0, 0)),            # b_conv (resident)
            ],
            out_specs=pl.BlockSpec((tile_n, L), lambda i, k: (i, 0)),
            scratch_shapes=[pltpu.VMEM((tile_n, L), jnp.float32)]),
        compiler_params=pltpu.CompilerParams(
            dimension_semantics=("parallel", "arbitrary"),
            vmem_limit_bytes=_FALLBACK_VMEM_LIMIT),
    )(adj_i8, cur, msg, wconv, bconv)


def _readout_call(cur, subg_pad, y1h_pad, wout, bout, w1, b1, w2p, b2p,
                  *, tile_n, num_real):
    n_pad = cur.shape[0]
    b_pad = subg_pad.shape[0]
    nt = n_pad // tile_n
    kernel = functools.partial(readout_kernel, num_real=num_real)
    return pl.pallas_call(
        kernel,
        out_shape=(jax.ShapeDtypeStruct((b_pad, CLASS_PAD), jnp.float32),
                   jax.ShapeDtypeStruct((1, 1), jnp.float32),
                   jax.ShapeDtypeStruct((1, 1), jnp.float32)),
        grid_spec=pltpu.PrefetchScalarGridSpec(
            num_scalar_prefetch=0, grid=(nt,),
            in_specs=[
                pl.BlockSpec((tile_n, LATENT_DIM), lambda i: (i, 0)),     # cur row tile
                pl.BlockSpec((b_pad, tile_n), lambda i: (0, i)),          # pool column tile
                pl.BlockSpec((b_pad, CLASS_PAD), lambda i: (0, 0)),       # labels one-hot
                pl.BlockSpec((LATENT_DIM, OUT_DIM), lambda i: (0, 0)),    # W_out
                pl.BlockSpec((1, OUT_DIM), lambda i: (0, 0)),             # b_out
                pl.BlockSpec((OUT_DIM, HIDDEN), lambda i: (0, 0)),        # W1
                pl.BlockSpec((1, HIDDEN), lambda i: (0, 0)),              # b1
                pl.BlockSpec((HIDDEN, CLASS_PAD), lambda i: (0, 0)),      # W2 (class-padded)
                pl.BlockSpec((1, CLASS_PAD), lambda i: (0, 0)),           # b2 (class-padded)
            ],
            out_specs=(
                pl.BlockSpec((b_pad, CLASS_PAD), lambda i: (0, 0)),
                pl.BlockSpec((1, 1), lambda i: (0, 0),
                             memory_space=pltpu.MemorySpace.SMEM),
                pl.BlockSpec((1, 1), lambda i: (0, 0),
                             memory_space=pltpu.MemorySpace.SMEM),
            ),
            scratch_shapes=[pltpu.VMEM((b_pad, OUT_DIM), jnp.float32)]),
        compiler_params=pltpu.CompilerParams(
            dimension_semantics=("arbitrary",),
            vmem_limit_bytes=_FALLBACK_VMEM_LIMIT),
    )(cur, subg_pad, y1h_pad, wout, bout, w1, b1, w2p, b2p)


# ---------------------------------------------------------------------------
# Full forward (Classifier.forward equivalent)
# ---------------------------------------------------------------------------
@functools.partial(jax.jit, static_argnames=("num_graphs",))
def classifier_forward(tags_pad, adj_i8_pad, subg_pad, y1h_pad, params, *, num_graphs):
    (wn2l, bn2l, wconv, bconv, wout, bout, w1, b1, w2, b2) = params
    n_pad = adj_i8_pad.shape[0]
    b_pad = subg_pad.shape[0]

    # Class-pad the final layer so logits are a lane-dense (B,128) slab; padded
    # class columns get -1e30 bias -> identical log_softmax over the real 4 classes.
    w2p = jnp.zeros((HIDDEN, CLASS_PAD), jnp.float32).at[:, :NUM_CLASS].set(w2)
    b2p = jnp.full((1, CLASS_PAD), NEG_INF, jnp.float32).at[:, :NUM_CLASS].set(b2)

    if _fast_path_ok(n_pad, b_pad):
        # Adjacency-VMEM-resident fused path: adjacency read from HBM exactly once.
        logits_pad, loss, acc = _fused_call(
            tags_pad, subg_pad, y1h_pad, adj_i8_pad,
            wn2l, bn2l, wconv, bconv, wout, bout, w1, b1, w2p, b2p,
            num_real=num_graphs)
    else:
        # Tiled pipelined fallback for graphs whose adjacency doesn't fit VMEM.
        tile = 512 if n_pad % 512 == 0 else (256 if n_pad % 256 == 0 else 128)
        msg, cur = _init_call(tags_pad, wn2l, bn2l, tile_n=tile)
        for _ in range(MAX_LV):
            cur = _propagate_call(adj_i8_pad, cur, msg, wconv, bconv,
                                  tile_n=tile, tile_k=tile)
        logits_pad, loss, acc = _readout_call(cur, subg_pad, y1h_pad, wout, bout,
                                              w1, b1, w2p, b2p,
                                              tile_n=tile, num_real=num_graphs)
    return logits_pad[:num_graphs, :NUM_CLASS], loss[0, 0], acc[0, 0]


def prepare_batch(node_tags, adj, subg, labels):
    """Host-side PrepareFeatureLabel equivalent: pad + narrow dtypes OUTSIDE the
    jitted forward so the kernels are the only consumers of the big adjacency
    (int8 cast happens BEFORE padding; no f32 padded temp is ever created)."""
    node_tags = np.asarray(node_tags, dtype=np.int32)
    adj_i8 = np.asarray(adj, dtype=np.int8)            # 0/1 is exact in int8
    subg = np.asarray(subg, dtype=np.float32)
    labels = np.asarray(labels, dtype=np.int32)

    N = node_tags.shape[0]
    B = int(labels.shape[0])
    b_pad = _round_up(B, 8)
    n128 = _round_up(N, 128)
    n_pad = n128 if _fast_path_ok(n128, b_pad) else _round_up(N, 512)

    tags_pad = np.full((n_pad, 1), -1, dtype=np.int32)
    tags_pad[:N, 0] = node_tags
    adj_pad = np.zeros((n_pad, n_pad), dtype=np.int8)
    adj_pad[:N, :N] = adj_i8
    subg_pad = np.zeros((b_pad, n_pad), dtype=np.float32)
    subg_pad[:B, :N] = subg
    y1h_pad = np.zeros((b_pad, CLASS_PAD), dtype=np.float32)
    y1h_pad[np.arange(B), labels] = 1.0

    return (jnp.asarray(tags_pad), jnp.asarray(adj_pad), jnp.asarray(subg_pad),
            jnp.asarray(y1h_pad), B)


def init_params(key):
    def lin(k, fan_in, fan_out, scale=0.1):
        kw, kb = jax.random.split(k)
        w = scale * jax.random.normal(kw, (fan_in, fan_out), dtype=jnp.float32)
        b = scale * jax.random.normal(kb, (1, fan_out), dtype=jnp.float32)
        return w, b
    ks = jax.random.split(key, 5)
    wn2l, bn2l = lin(ks[0], FEAT_DIM, LATENT_DIM)      # s2v.w_n2l
    wconv, bconv = lin(ks[1], LATENT_DIM, LATENT_DIM)  # s2v.conv_params
    wout, bout = lin(ks[2], LATENT_DIM, OUT_DIM)       # s2v.out_params
    w1, b1 = lin(ks[3], OUT_DIM, HIDDEN)               # mlp.h1_weights
    w2, b2 = lin(ks[4], HIDDEN, NUM_CLASS)             # mlp.h2_weights
    return (wn2l, bn2l, wconv, bconv, wout, bout, w1, b1, w2, b2)


def reference_forward(node_tags, adj, subg, y_onehot, params):
    """Pure-JAX reference of the same forward (loose numeric sanity check)."""
    (wn2l, bn2l, wconv, bconv, wout, bout, w1, b1, w2, b2) = params
    x = jax.nn.one_hot(node_tags, FEAT_DIM, dtype=jnp.float32)
    msg = x @ wn2l + bn2l
    cur = jax.nn.relu(msg)
    for _ in range(MAX_LV):
        cur = jax.nn.relu((adj @ cur) @ wconv + bconv + msg)
    relu_fp = jax.nn.relu(cur @ wout + bout)
    embed = jax.nn.relu(subg @ relu_fp)
    h1 = jax.nn.relu(embed @ w1 + b1)
    logits = h1 @ w2 + b2
    logp = jax.nn.log_softmax(logits, axis=1)
    loss = -jnp.mean(jnp.sum(y_onehot * logp, axis=1))
    return logp, loss


if __name__ == "__main__":
    key = jax.random.PRNGKey(0)
    k_params, k_adj, k_tags, k_lab = jax.random.split(key, 4)

    # Synthetic batch of small graphs (replaces `batch_graph` objects).
    nodes_per_graph = [5, 6, 7, 6]
    B = len(nodes_per_graph)
    N = sum(nodes_per_graph)
    graph_id = jnp.array(sum([[g] * n for g, n in enumerate(nodes_per_graph)], []),
                         dtype=jnp.int32)                                       # (N,)
    subg = (graph_id[None, :] == jnp.arange(B)[:, None]).astype(jnp.float32)    # (B, N)

    rand = (jax.random.uniform(k_adj, (N, N)) < 0.4).astype(jnp.float32)
    sym = jnp.maximum(rand, rand.T)
    same_graph = (graph_id[:, None] == graph_id[None, :]).astype(jnp.float32)
    adj = sym * same_graph * (1.0 - jnp.eye(N, dtype=jnp.float32))              # (N, N)

    # PrepareFeatureLabel: node tags + labels (one-hot of tags is built in-kernel).
    node_tags = jax.random.randint(k_tags, (N,), 0, FEAT_DIM)
    labels = jax.random.randint(k_lab, (B,), 0, NUM_CLASS)
    y_onehot = jax.nn.one_hot(labels, NUM_CLASS, dtype=jnp.float32)             # (B, C)

    params = init_params(k_params)

    tags_pad, adj_i8_pad, subg_pad, y1h_pad, num_graphs = prepare_batch(
        node_tags, adj, subg, labels)
    logits, loss, acc = classifier_forward(tags_pad, adj_i8_pad, subg_pad, y1h_pad,
                                           params, num_graphs=num_graphs)
    jax.block_until_ready((logits, loss, acc))

    assert logits.shape == (B, NUM_CLASS)
    assert bool(jnp.isfinite(loss)) and bool(jnp.isfinite(acc))

    # Loose sanity check against pure-JAX reference (bf16 MXU operands -> small drift).
    ref_logp, ref_loss = reference_forward(node_tags, adj, subg, y_onehot, params)
    assert float(jnp.max(jnp.abs(logits - ref_logp))) < 0.3
    assert abs(float(loss) - float(ref_loss)) < 0.2

    print("KERNEL_OK")
</pallas_src>

<mosaic_0001>
module attributes {stable_mosaic.version = 11 : i64} {
  func.func @fused_kernel(%arg0: i32, %arg1: memref<128x1xi32, #tpu.memory_space<vmem>>, %arg2: memref<8x128xf32, #tpu.memory_space<vmem>>, %arg3: memref<8x128xf32, #tpu.memory_space<vmem>>, %arg4: memref<16x32xf32, #tpu.memory_space<vmem>>, %arg5: memref<1x32xf32, #tpu.memory_space<vmem>>, %arg6: memref<32x32xf32, #tpu.memory_space<vmem>>, %arg7: memref<1x32xf32, #tpu.memory_space<vmem>>, %arg8: memref<32x32xf32, #tpu.memory_space<vmem>>, %arg9: memref<1x32xf32, #tpu.memory_space<vmem>>, %arg10: memref<32x32xf32, #tpu.memory_space<vmem>>, %arg11: memref<1x32xf32, #tpu.memory_space<vmem>>, %arg12: memref<32x128xf32, #tpu.memory_space<vmem>>, %arg13: memref<1x128xf32, #tpu.memory_space<vmem>>, %arg14: memref<128x128xi8, #tpu.memory_space<any>>, %arg15: memref<8x128xf32, #tpu.memory_space<vmem>>, %arg16: memref<1x1xf32, #tpu.memory_space<smem>>, %arg17: memref<1x1xf32, #tpu.memory_space<smem>>, %arg18: memref<128x128xi8, #tpu.memory_space<vmem>>, %arg19: memref<128x32xf32, #tpu.memory_space<vmem>>, %arg20: memref<128x32xf32, #tpu.memory_space<vmem>>, %arg21: memref<1x!tpu.dma_semaphore, #tpu.memory_space<semaphore_mem>>) attributes {dimension_semantics = [#tpu.dimension_semantics<arbitrary>], iteration_bounds = array<i64: 1>, scalar_prefetch = 0 : i64, scratch_operands = 4 : i64, tpu.core_type = #tpu.core_type<tc>, window_params = [{pipeline_mode = #tpu.pipeline_mode<synchronous>, transform_indices = @transform_0, window_bounds = array<i64: 128, 1>}, {pipeline_mode = #tpu.pipeline_mode<synchronous>, transform_indices = @transform_1, window_bounds = array<i64: 8, 128>}, {pipeline_mode = #tpu.pipeline_mode<synchronous>, transform_indices = @transform_2, window_bounds = array<i64: 8, 128>}, {pipeline_mode = #tpu.pipeline_mode<synchronous>, transform_indices = @transform_3, window_bounds = array<i64: 16, 32>}, {pipeline_mode = #tpu.pipeline_mode<synchronous>, transform_indices = @transform_4, window_bounds = array<i64: 1, 32>}, {pipeline_mode = #tpu.pipeline_mode<synchronous>, transform_indices = @transform_5, window_bounds = array<i64: 32, 32>}, {pipeline_mode = #tpu.pipeline_mode<synchronous>, transform_indices = @transform_6, window_bounds = array<i64: 1, 32>}, {pipeline_mode = #tpu.pipeline_mode<synchronous>, transform_indices = @transform_7, window_bounds = array<i64: 32, 32>}, {pipeline_mode = #tpu.pipeline_mode<synchronous>, transform_indices = @transform_8, window_bounds = array<i64: 1, 32>}, {pipeline_mode = #tpu.pipeline_mode<synchronous>, transform_indices = @transform_9, window_bounds = array<i64: 32, 32>}, {pipeline_mode = #tpu.pipeline_mode<synchronous>, transform_indices = @transform_10, window_bounds = array<i64: 1, 32>}, {pipeline_mode = #tpu.pipeline_mode<synchronous>, transform_indices = @transform_11, window_bounds = array<i64: 32, 128>}, {pipeline_mode = #tpu.pipeline_mode<synchronous>, transform_indices = @transform_12, window_bounds = array<i64: 1, 128>}, {}, {pipeline_mode = #tpu.pipeline_mode<synchronous>, transform_indices = @transform_14, window_bounds = array<i64: 8, 128>}, {transform_indices = @transform_15, window_bounds = array<i64: 1, 1>}, {transform_indices = @transform_16, window_bounds = array<i64: 1, 1>}]} {
    %c0_i32 = arith.constant 0 : i32
    %0 = tpu.memref_slice %arg21[%c0_i32] : memref<1x!tpu.dma_semaphore, #tpu.memory_space<semaphore_mem>> -> memref<1x!tpu.dma_semaphore, #tpu.memory_space<semaphore_mem>>
    %1 = tpu.memref_squeeze %0 : memref<1x!tpu.dma_semaphore, #tpu.memory_space<semaphore_mem>> -> memref<!tpu.dma_semaphore, #tpu.memory_space<semaphore_mem>>
    tpu.enqueue_dma source(%arg14 : memref<128x128xi8, #tpu.memory_space<any>>) target(%arg18 : memref<128x128xi8, #tpu.memory_space<vmem>>) target_semaphore(%1 : memref<!tpu.dma_semaphore, #tpu.memory_space<semaphore_mem>>)
    %c0 = arith.constant 0 : index
    %c0_0 = arith.constant 0 : index
    %2 = vector.load %arg1[%c0, %c0_0] : memref<128x1xi32, #tpu.memory_space<vmem>>, vector<128x1xi32>
    %3 = tpu.iota {dimensions = array<i32: 1>} : vector<128x16xi32>
    %4 = vector.broadcast %2 : vector<128x1xi32> to vector<128x16xi32>
    %5 = arith.cmpi eq, %4, %3 : vector<128x16xi32>
    %6 = arith.extui %5 : vector<128x16xi1> to vector<128x16xi32>
    %7 = arith.sitofp %6 : vector<128x16xi32> to vector<128x16xf32>
    %c0_1 = arith.constant 0 : index
    %c0_2 = arith.constant 0 : index
    %8 = vector.load %arg4[%c0_1, %c0_2] : memref<16x32xf32, #tpu.memory_space<vmem>>, vector<16x32xf32>
    %cst = arith.constant dense<0.000000e+00> : vector<128x32xf32>
    %9 = tpu.matmul %7, %8, %cst {dimension_numbers = #tpu.dot_dimension_numbers<[1], [0], [0], [1], [0, 0, 1, 1], [], []>} : vector<128x16xf32>, vector<16x32xf32>, vector<128x32xf32> -> vector<128x32xf32>
    %c0_3 = arith.constant 0 : index
    %c0_4 = arith.constant 0 : index
    %10 = vector.load %arg5[%c0_3, %c0_4] : memref<1x32xf32, #tpu.memory_space<vmem>>, vector<1x32xf32>
    %11 = vector.broadcast %10 : vector<1x32xf32> to vector<128x32xf32>
    %12 = arith.addf %9, %11 : vector<128x32xf32>
    %c0_5 = arith.constant 0 : index
    %c0_6 = arith.constant 0 : index
    %13 = vector.load %arg19[%c0_5, %c0_6] : memref<128x32xf32, #tpu.memory_space<vmem>>, vector<128x32xf32>
    tpu.vector_store %arg19[%c0_5, %c0_6], %12 {strides = array<i32>} : memref<128x32xf32, #tpu.memory_space<vmem>>, vector<128x32xf32>,
    %cst_7 = arith.constant 0.000000e+00 : f32
    %14 = vector.broadcast %cst_7 : f32 to vector<128x32xf32>
    %15 = arith.maximumf %12, %14 : vector<128x32xf32>
    %c0_8 = arith.constant 0 : index
    %c0_9 = arith.constant 0 : index
    %16 = vector.load %arg20[%c0_8, %c0_9] : memref<128x32xf32, #tpu.memory_space<vmem>>, vector<128x32xf32>
    tpu.vector_store %arg20[%c0_8, %c0_9], %15 {strides = array<i32>} : memref<128x32xf32, #tpu.memory_space<vmem>>, vector<128x32xf32>,
    %c0_i32_10 = arith.constant 0 : i32
    %17 = tpu.memref_slice %arg21[%c0_i32_10] : memref<1x!tpu.dma_semaphore, #tpu.memory_space<semaphore_mem>> -> memref<1x!tpu.dma_semaphore, #tpu.memory_space<semaphore_mem>>
    %18 = tpu.memref_squeeze %17 : memref<1x!tpu.dma_semaphore, #tpu.memory_space<semaphore_mem>> -> memref<!tpu.dma_semaphore, #tpu.memory_space<semaphore_mem>>
    tpu.wait_dma2 semaphore(%18 : memref<!tpu.dma_semaphore, #tpu.memory_space<semaphore_mem>>) src(%arg14 : memref<128x128xi8, #tpu.memory_space<any>>) dst(%arg18 : memref<128x128xi8, #tpu.memory_space<vmem>>)
    %c0_11 = arith.constant 0 : index
    %c0_12 = arith.constant 0 : index
    %19 = vector.load %arg6[%c0_11, %c0_12] : memref<32x32xf32, #tpu.memory_space<vmem>>, vector<32x32xf32>
    %c0_13 = arith.constant 0 : index
    %c0_14 = arith.constant 0 : index
    %20 = vector.load %arg7[%c0_13, %c0_14] : memref<1x32xf32, #tpu.memory_space<vmem>>, vector<1x32xf32>
    %c0_15 = arith.constant 0 : index
    %c0_16 = arith.constant 0 : index
    %21 = vector.load %arg20[%c0_15, %c0_16] : memref<128x32xf32, #tpu.memory_space<vmem>>, vector<128x32xf32>
    %cst_17 = arith.constant dense<0.000000e+00> : vector<128x32xf32>
    %22 = tpu.matmul %21, %19, %cst_17 {dimension_numbers = #tpu.dot_dimension_numbers<[1], [0], [0], [1], [0, 0, 1, 1], [], []>} : vector<128x32xf32>, vector<32x32xf32>, vector<128x32xf32> -> vector<128x32xf32>
    %23 = arith.truncf %22 : vector<128x32xf32> to vector<128x32xbf16>
    %c0_i32_18 = arith.constant 0 : i32
    %c128_i32 = arith.constant 128 : i32
    %24 = arith.muli %c0_i32_18, %c128_i32 : i32
    %25 = tpu.assume_multiple %24, 128 : i32
    %26 = arith.index_cast %25 : i32 to index
    %c0_19 = arith.constant 0 : index
    %27 = vector.load %arg18[%26, %c0_19] : memref<128x128xi8, #tpu.memory_space<vmem>>, vector<128x128xi8>
    %28 = arith.sitofp %27 : vector<128x128xi8> to vector<128x128xbf16>
    %cst_20 = arith.constant dense<0.000000e+00> : vector<128x32xf32>
    %29 = tpu.matmul %28, %23, %cst_20 {dimension_numbers = #tpu.dot_dimension_numbers<[1], [0], [0], [1], [0, 0, 1, 1], [], []>} : vector<128x128xbf16>, vector<128x32xbf16>, vector<128x32xf32> -> vector<128x32xf32>
    %30 = vector.broadcast %20 : vector<1x32xf32> to vector<128x32xf32>
    %31 = arith.addf %29, %30 : vector<128x32xf32>
    %32 = arith.index_cast %25 : i32 to index
    %c0_21 = arith.constant 0 : index
    %33 = vector.load %arg19[%32, %c0_21] : memref<128x32xf32, #tpu.memory_space<vmem>>, vector<128x32xf32>
    %34 = arith.addf %31, %33 : vector<128x32xf32>
    %cst_22 = arith.constant 0.000000e+00 : f32
    %35 = vector.broadcast %cst_22 : f32 to vector<128x32xf32>
    %36 = arith.maximumf %34, %35 : vector<128x32xf32>
    %37 = arith.index_cast %25 : i32 to index
    %c0_23 = arith.constant 0 : index
    %38 = vector.load %arg20[%37, %c0_23] : memref<128x32xf32, #tpu.memory_space<vmem>>, vector<128x32xf32>
    tpu.vector_store %arg20[%37, %c0_23], %36 {strides = array<i32>} : memref<128x32xf32, #tpu.memory_space<vmem>>, vector<128x32xf32>,
    %c1_i32 = arith.constant 1 : i32
    %c0_24 = arith.constant 0 : index
    %c0_25 = arith.constant 0 : index
    %39 = vector.load %arg20[%c0_24, %c0_25] : memref<128x32xf32, #tpu.memory_space<vmem>>, vector<128x32xf32>
    %cst_26 = arith.constant dense<0.000000e+00> : vector<128x32xf32>
    %40 = tpu.matmul %39, %19, %cst_26 {dimension_numbers = #tpu.dot_dimension_numbers<[1], [0], [0], [1], [0, 0, 1, 1], [], []>} : vector<128x32xf32>, vector<32x32xf32>, vector<128x32xf32> -> vector<128x32xf32>
    %41 = arith.truncf %40 : vector<128x32xf32> to vector<128x32xbf16>
    %c0_i32_27 = arith.constant 0 : i32
    %c128_i32_28 = arith.constant 128 : i32
    %42 = arith.muli %c0_i32_27, %c128_i32_28 : i32
    %43 = tpu.assume_multiple %42, 128 : i32
    %44 = arith.index_cast %43 : i32 to index
    %c0_29 = arith.constant 0 : index
    %45 = vector.load %arg18[%44, %c0_29] : memref<128x128xi8, #tpu.memory_space<vmem>>, vector<128x128xi8>
    %46 = arith.sitofp %45 : vector<128x128xi8> to vector<128x128xbf16>
    %cst_30 = arith.constant dense<0.000000e+00> : vector<128x32xf32>
    %47 = tpu.matmul %46, %41, %cst_30 {dimension_numbers = #tpu.dot_dimension_numbers<[1], [0], [0], [1], [0, 0, 1, 1], [], []>} : vector<128x128xbf16>, vector<128x32xbf16>, vector<128x32xf32> -> vector<128x32xf32>
    %48 = vector.broadcast %20 : vector<1x32xf32> to vector<128x32xf32>
    %49 = arith.addf %47, %48 : vector<128x32xf32>
    %50 = arith.index_cast %43 : i32 to index
    %c0_31 = arith.constant 0 : index
    %51 = vector.load %arg19[%50, %c0_31] : memref<128x32xf32, #tpu.memory_space<vmem>>, vector<128x32xf32>
    %52 = arith.addf %49, %51 : vector<128x32xf32>
    %cst_32 = arith.constant 0.000000e+00 : f32
    %53 = vector.broadcast %cst_32 : f32 to vector<128x32xf32>
    %54 = arith.maximumf %52, %53 : vector<128x32xf32>
    %55 = arith.index_cast %43 : i32 to index
    %c0_33 = arith.constant 0 : index
    %56 = vector.load %arg20[%55, %c0_33] : memref<128x32xf32, #tpu.memory_space<vmem>>, vector<128x32xf32>
    tpu.vector_store %arg20[%55, %c0_33], %54 {strides = array<i32>} : memref<128x32xf32, #tpu.memory_space<vmem>>, vector<128x32xf32>,
    %c1_i32_34 = arith.constant 1 : i32
    %c0_35 = arith.constant 0 : index
    %c0_36 = arith.constant 0 : index
    %57 = vector.load %arg20[%c0_35, %c0_36] : memref<128x32xf32, #tpu.memory_space<vmem>>, vector<128x32xf32>
    %cst_37 = arith.constant dense<0.000000e+00> : vector<128x32xf32>
    %58 = tpu.matmul %57, %19, %cst_37 {dimension_numbers = #tpu.dot_dimension_numbers<[1], [0], [0], [1], [0, 0, 1, 1], [], []>} : vector<128x32xf32>, vector<32x32xf32>, vector<128x32xf32> -> vector<128x32xf32>
    %59 = arith.truncf %58 : vector<128x32xf32> to vector<128x32xbf16>
    %c0_i32_38 = arith.constant 0 : i32
    %c128_i32_39 = arith.constant 128 : i32
    %60 = arith.muli %c0_i32_38, %c128_i32_39 : i32
    %61 = tpu.assume_multiple %60, 128 : i32
    %62 = arith.index_cast %61 : i32 to index
    %c0_40 = arith.constant 0 : index
    %63 = vector.load %arg18[%62, %c0_40] : memref<128x128xi8, #tpu.memory_space<vmem>>, vector<128x128xi8>
    %64 = arith.sitofp %63 : vector<128x128xi8> to vector<128x128xbf16>
    %cst_41 = arith.constant dense<0.000000e+00> : vector<128x32xf32>
    %65 = tpu.matmul %64, %59, %cst_41 {dimension_numbers = #tpu.dot_dimension_numbers<[1], [0], [0], [1], [0, 0, 1, 1], [], []>} : vector<128x128xbf16>, vector<128x32xbf16>, vector<128x32xf32> -> vector<128x32xf32>
    %66 = vector.broadcast %20 : vector<1x32xf32> to vector<128x32xf32>
    %67 = arith.addf %65, %66 : vector<128x32xf32>
    %68 = arith.index_cast %61 : i32 to index
    %c0_42 = arith.constant 0 : index
    %69 = vector.load %arg19[%68, %c0_42] : memref<128x32xf32, #tpu.memory_space<vmem>>, vector<128x32xf32>
    %70 = arith.addf %67, %69 : vector<128x32xf32>
    %cst_43 = arith.constant 0.000000e+00 : f32
    %71 = vector.broadcast %cst_43 : f32 to vector<128x32xf32>
    %72 = arith.maximumf %70, %71 : vector<128x32xf32>
    %73 = arith.index_cast %61 : i32 to index
    %c0_44 = arith.constant 0 : index
    %74 = vector.load %arg20[%73, %c0_44] : memref<128x32xf32, #tpu.memory_space<vmem>>, vector<128x32xf32>
    tpu.vector_store %arg20[%73, %c0_44], %72 {strides = array<i32>} : memref<128x32xf32, #tpu.memory_space<vmem>>, vector<128x32xf32>,
    %c1_i32_45 = arith.constant 1 : i32
    %c0_46 = arith.constant 0 : index
    %c0_47 = arith.constant 0 : index
    %75 = vector.load %arg20[%c0_46, %c0_47] : memref<128x32xf32, #tpu.memory_space<vmem>>, vector<128x32xf32>
    %c0_48 = arith.constant 0 : index
    %c0_49 = arith.constant 0 : index
    %76 = vector.load %arg8[%c0_48, %c0_49] : memref<32x32xf32, #tpu.memory_space<vmem>>, vector<32x32xf32>
    %cst_50 = arith.constant dense<0.000000e+00> : vector<128x32xf32>
    %77 = tpu.matmul %75, %76, %cst_50 {dimension_numbers = #tpu.dot_dimension_numbers<[1], [0], [0], [1], [0, 0, 1, 1], [], []>} : vector<128x32xf32>, vector<32x32xf32>, vector<128x32xf32> -> vector<128x32xf32>
    %c0_51 = arith.constant 0 : index
    %c0_52 = arith.constant 0 : index
    %78 = vector.load %arg9[%c0_51, %c0_52] : memref<1x32xf32, #tpu.memory_space<vmem>>, vector<1x32xf32>
    %79 = vector.broadcast %78 : vector<1x32xf32> to vector<128x32xf32>
    %80 = arith.addf %77, %79 : vector<128x32xf32>
    %cst_53 = arith.constant 0.000000e+00 : f32
    %81 = vector.broadcast %cst_53 : f32 to vector<128x32xf32>
    %82 = arith.maximumf %80, %81 : vector<128x32xf32>
    %c0_54 = arith.constant 0 : index
    %c0_55 = arith.constant 0 : index
    %83 = vector.load %arg2[%c0_54, %c0_55] : memref<8x128xf32, #tpu.memory_space<vmem>>, vector<8x128xf32>
    %cst_56 = arith.constant dense<0.000000e+00> : vector<8x32xf32>
    %84 = tpu.matmul %83, %82, %cst_56 {dimension_numbers = #tpu.dot_dimension_numbers<[1], [0], [0], [1], [0, 0, 1, 1], [], []>} : vector<8x128xf32>, vector<128x32xf32>, vector<8x32xf32> -> vector<8x32xf32>
    %cst_57 = arith.constant 0.000000e+00 : f32
    %85 = vector.broadcast %cst_57 : f32 to vector<8x32xf32>
    %86 = arith.maximumf %84, %85 : vector<8x32xf32>
    %c0_58 = arith.constant 0 : index
    %c0_59 = arith.constant 0 : index
    %87 = vector.load %arg10[%c0_58, %c0_59] : memref<32x32xf32, #tpu.memory_space<vmem>>, vector<32x32xf32>
    %cst_60 = arith.constant dense<0.000000e+00> : vector<8x32xf32>
    %88 = tpu.matmul %86, %87, %cst_60 {dimension_numbers = #tpu.dot_dimension_numbers<[1], [0], [0], [1], [0, 0, 1, 1], [], []>} : vector<8x32xf32>, vector<32x32xf32>, vector<8x32xf32> -> vector<8x32xf32>
    %c0_61 = arith.constant 0 : index
    %c0_62 = arith.constant 0 : index
    %89 = vector.load %arg11[%c0_61, %c0_62] : memref<1x32xf32, #tpu.memory_space<vmem>>, vector<1x32xf32>
    %90 = vector.broadcast %89 : vector<1x32xf32> to vector<8x32xf32>
    %91 = arith.addf %88, %90 : vector<8x32xf32>
    %cst_63 = arith.constant 0.000000e+00 : f32
    %92 = vector.broadcast %cst_63 : f32 to vector<8x32xf32>
    %93 = arith.maximumf %91, %92 : vector<8x32xf32>
    %c0_64 = arith.constant 0 : index
    %c0_65 = arith.constant 0 : index
    %94 = vector.load %arg12[%c0_64, %c0_65] : memref<32x128xf32, #tpu.memory_space<vmem>>, vector<32x128xf32>
    %cst_66 = arith.constant dense<0.000000e+00> : vector<8x128xf32>
    %95 = tpu.matmul %93, %94, %cst_66 {dimension_numbers = #tpu.dot_dimension_numbers<[1], [0], [0], [1], [0, 0, 1, 1], [], []>} : vector<8x32xf32>, vector<32x128xf32>, vector<8x128xf32> -> vector<8x128xf32>
    %c0_67 = arith.constant 0 : index
    %c0_68 = arith.constant 0 : index
    %96 = vector.load %arg13[%c0_67, %c0_68] : memref<1x128xf32, #tpu.memory_space<vmem>>, vector<1x128xf32>
    %97 = vector.broadcast %96 : vector<1x128xf32> to vector<8x128xf32>
    %98 = arith.addf %95, %97 : vector<8x128xf32>
    %c0_69 = arith.constant 0 : index
    %c0_70 = arith.constant 0 : index
    %99 = vector.load %arg3[%c0_69, %c0_70] : memref<8x128xf32, #tpu.memory_space<vmem>>, vector<8x128xf32>
    %cst_71 = arith.constant dense<0xFF800000> : vector<8xf32>
    %100 = vector.multi_reduction <maximumf>, %98, %cst_71 [1] : vector<8x128xf32> to vector<8xf32>
    %101 = vector.shape_cast %100 : vector<8xf32> to vector<8x1xf32>
    %102 = vector.broadcast %101 : vector<8x1xf32> to vector<8x128xf32>
    %103 = arith.subf %98, %102 : vector<8x128xf32>
    %104 = math.exp %103 : vector<8x128xf32>
    %cst_72 = arith.constant dense<0.000000e+00> : vector<8xf32>
    %105 = vector.multi_reduction <add>, %104, %cst_72 [1] : vector<8x128xf32> to vector<8xf32>
    %106 = vector.shape_cast %105 : vector<8xf32> to vector<8x1xf32>
    %107 = math.log %106 : vector<8x1xf32>
    %108 = vector.broadcast %107 : vector<8x1xf32> to vector<8x128xf32>
    %109 = arith.subf %103, %108 : vector<8x128xf32>
    %110 = arith.mulf %99, %109 : vector<8x128xf32>
    %111 = vector.shape_cast %110 : vector<8x128xf32> to vector<1x8x128xf32>
    %cst_73 = arith.constant dense<0.000000e+00> : vector<1xf32>
    %112 = vector.multi_reduction <add>, %111, %cst_73 [1, 2] : vector<1x8x128xf32> to vector<1xf32>
    %113 = vector.shape_cast %112 : vector<1xf32> to vector<1x1x1xf32>
    %114 = vector.extract %113[0, 0, 0] : f32 from vector<1x1x1xf32>
    %cst_74 = arith.constant 0.000000e+00 : f32
    %115 = arith.subf %cst_74, %114 : f32
    %cst_75 = arith.constant 2.500000e-01 : f32
    %116 = arith.mulf %115, %cst_75 : f32
    %117 = tpu.iota {dimensions = array<i32: 1>} : vector<8x128xi32>
    %cst_76 = arith.constant dense<0xFF800000> : vector<8xf32>
    %118 = vector.multi_reduction <maximumf>, %109, %cst_76 [1] : vector<8x128xf32> to vector<8xf32>
    %119 = vector.shape_cast %118 : vector<8xf32> to vector<8x1xf32>
    %120 = vector.broadcast %119 : vector<8x1xf32> to vector<8x128xf32>
    %121 = arith.cmpf oge, %109, %120 : vector<8x128xf32>
    %c129_i32 = arith.constant 129 : i32
    %122 = vector.broadcast %c129_i32 : i32 to vector<8x128xi32>
    %123 = arith.select %121, %117, %122 : vector<8x128xi1>, vector<8x128xi32>
    %cst_77 = arith.constant dense<2147483647> : vector<8xi32>
    %124 = vector.multi_reduction <minsi>, %123, %cst_77 [1] : vector<8x128xi32> to vector<8xi32>
    %125 = vector.shape_cast %124 : vector<8xi32> to vector<8x1xi32>
    %cst_78 = arith.constant 5.000000e-01 : f32
    %126 = vector.broadcast %cst_78 : f32 to vector<8x128xf32>
    %127 = arith.cmpf ogt, %99, %126 : vector<8x128xf32>
    %c129_i32_79 = arith.constant 129 : i32
    %128 = vector.broadcast %c129_i32_79 : i32 to vector<8x128xi32>
    %129 = arith.select %127, %117, %128 : vector<8x128xi1>, vector<8x128xi32>
    %cst_80 = arith.constant dense<2147483647> : vector<8xi32>
    %130 = vector.multi_reduction <minsi>, %129, %cst_80 [1] : vector<8x128xi32> to vector<8xi32>
    %131 = vector.shape_cast %130 : vector<8xi32> to vector<8x1xi32>
    %132 = arith.cmpi eq, %125, %131 : vector<8x1xi32>
    %133 = arith.extui %132 : vector<8x1xi1> to vector<8x1xi32>
    %134 = arith.sitofp %133 : vector<8x1xi32> to vector<8x1xf32>
    %135 = vector.shape_cast %134 : vector<8x1xf32> to vector<1x8x1xf32>
    %cst_81 = arith.constant dense<0.000000e+00> : vector<1xf32>
    %136 = vector.multi_reduction <add>, %135, %cst_81 [1, 2] : vector<1x8x1xf32> to vector<1xf32>
    %137 = vector.shape_cast %136 : vector<1xf32> to vector<1x1x1xf32>
    %138 = vector.extract %137[0, 0, 0] : f32 from vector<1x1x1xf32>
    %cst_82 = arith.constant 2.500000e-01 : f32
    %139 = arith.mulf %138, %cst_82 : f32
    %c0_83 = arith.constant 0 : index
    %c0_84 = arith.constant 0 : index
    %140 = vector.load %arg15[%c0_83, %c0_84] : memref<8x128xf32, #tpu.memory_space<vmem>>, vector<8x128xf32>
    tpu.vector_store %arg15[%c0_83, %c0_84], %109 {strides = array<i32>} : memref<8x128xf32, #tpu.memory_space<vmem>>, vector<8x128xf32>,
    %c0_85 = arith.constant 0 : index
    %c0_86 = arith.constant 0 : index
    %141 = memref.load %arg16[%c0_85, %c0_86] : memref<1x1xf32, #tpu.memory_space<smem>>
    memref.store %116, %arg16[%c0_85, %c0_86] : memref<1x1xf32, #tpu.memory_space<smem>>
    %c0_87 = arith.constant 0 : index
    %c0_88 = arith.constant 0 : index
    %142 = memref.load %arg17[%c0_87, %c0_88] : memref<1x1xf32, #tpu.memory_space<smem>>
    memref.store %139, %arg17[%c0_87, %c0_88] : memref<1x1xf32, #tpu.memory_space<smem>>
    return
  }
  func.func @transform_0(%arg0: i32) -> (i32, i32) {
    %c0_i32 = arith.constant 0 : i32
    %c0_i32_0 = arith.constant 0 : i32
    %c0_i32_1 = arith.constant 0 : i32
    return %c0_i32, %c0_i32_0 : i32, i32
  }
  func.func @transform_1(%arg0: i32) -> (i32, i32) {
    %c0_i32 = arith.constant 0 : i32
    %c0_i32_0 = arith.constant 0 : i32
    %c0_i32_1 = arith.constant 0 : i32
    return %c0_i32, %c0_i32_0 : i32, i32
  }
  func.func @transform_2(%arg0: i32) -> (i32, i32) {
    %c0_i32 = arith.constant 0 : i32
    %c0_i32_0 = arith.constant 0 : i32
    %c0_i32_1 = arith.constant 0 : i32
    return %c0_i32, %c0_i32_0 : i32, i32
  }
  func.func @transform_3(%arg0: i32) -> (i32, i32) {
    %c0_i32 = arith.constant 0 : i32
    %c0_i32_0 = arith.constant 0 : i32
    %c0_i32_1 = arith.constant 0 : i32
    return %c0_i32, %c0_i32_0 : i32, i32
  }
  func.func @transform_4(%arg0: i32) -> (i32, i32) {
    %c0_i32 = arith.constant 0 : i32
    %c0_i32_0 = arith.constant 0 : i32
    %c0_i32_1 = arith.constant 0 : i32
    return %c0_i32, %c0_i32_0 : i32, i32
  }
  func.func @transform_5(%arg0: i32) -> (i32, i32) {
    %c0_i32 = arith.constant 0 : i32
    %c0_i32_0 = arith.constant 0 : i32
    %c0_i32_1 = arith.constant 0 : i32
    return %c0_i32, %c0_i32_0 : i32, i32
  }
  func.func @transform_6(%arg0: i32) -> (i32, i32) {
    %c0_i32 = arith.constant 0 : i32
    %c0_i32_0 = arith.constant 0 : i32
    %c0_i32_1 = arith.constant 0 : i32
    return %c0_i32, %c0_i32_0 : i32, i32
  }
  func.func @transform_7(%arg0: i32) -> (i32, i32) {
    %c0_i32 = arith.constant 0 : i32
    %c0_i32_0 = arith.constant 0 : i32
    %c0_i32_1 = arith.constant 0 : i32
    return %c0_i32, %c0_i32_0 : i32, i32
  }
  func.func @transform_8(%arg0: i32) -> (i32, i32) {
    %c0_i32 = arith.constant 0 : i32
    %c0_i32_0 = arith.constant 0 : i32
    %c0_i32_1 = arith.constant 0 : i32
    return %c0_i32, %c0_i32_0 : i32, i32
  }
  func.func @transform_9(%arg0: i32) -> (i32, i32) {
    %c0_i32 = arith.constant 0 : i32
    %c0_i32_0 = arith.constant 0 : i32
    %c0_i32_1 = arith.constant 0 : i32
    return %c0_i32, %c0_i32_0 : i32, i32
  }
  func.func @transform_10(%arg0: i32) -> (i32, i32) {
    %c0_i32 = arith.constant 0 : i32
    %c0_i32_0 = arith.constant 0 : i32
    %c0_i32_1 = arith.constant 0 : i32
    return %c0_i32, %c0_i32_0 : i32, i32
  }
  func.func @transform_11(%arg0: i32) -> (i32, i32) {
    %c0_i32 = arith.constant 0 : i32
    %c0_i32_0 = arith.constant 0 : i32
    %c0_i32_1 = arith.constant 0 : i32
    return %c0_i32, %c0_i32_0 : i32, i32
  }
  func.func @transform_12(%arg0: i32) -> (i32, i32) {
    %c0_i32 = arith.constant 0 : i32
    %c0_i32_0 = arith.constant 0 : i32
    %c0_i32_1 = arith.constant 0 : i32
    return %c0_i32, %c0_i32_0 : i32, i32
  }
  func.func @transform_14(%arg0: i32) -> (i32, i32) {
    %c0_i32 = arith.constant 0 : i32
    %c0_i32_0 = arith.constant 0 : i32
    %c0_i32_1 = arith.constant 0 : i32
    return %c0_i32, %c0_i32_0 : i32, i32
  }
  func.func @transform_15(%arg0: i32) -> (i32, i32) {
    %c0_i32 = arith.constant 0 : i32
    %c0_i32_0 = arith.constant 0 : i32
    %c0_i32_1 = arith.constant 0 : i32
    return %c0_i32, %c0_i32_0 : i32, i32
  }
  func.func @transform_16(%arg0: i32) -> (i32, i32) {
    %c0_i32 = arith.constant 0 : i32
    %c0_i32_0 = arith.constant 0 : i32
    %c0_i32_1 = arith.constant 0 : i32
    return %c0_i32, %c0_i32_0 : i32, i32
  }
}

</mosaic_0001>

<bundles_post_ra>
// kernel: classifier_forward.1
= control target key start
LH: loop header
LB: loop body
LE: loop exit
PB: predicated region body
PF: predicated region fallthrough
CT: control target
= control target key end

     0   :  { %s2403_s0 = inlined_call_operand.vmem [shape: s32[128,1], index: 0, kind: input, shape index: {}]   ;;  %s2404_s1 = inlined_call_operand.vmem [shape: f32[8,128], index: 1, kind: input, shape index: {}]   ;;  %s2405_s2 = inlined_call_operand.vmem [shape: f32[8,128], index: 2, kind: input, shape index: {}]   ;;  %s2406_s3 = inlined_call_operand.vmem [shape: f32[16,32], index: 3, kind: input, shape index: {}]   ;;  %s2407_s4 = inlined_call_operand.vmem [shape: f32[1,32], index: 4, kind: input, shape index: {}]   ;;  %s2408_s5 = inlined_call_operand.vmem [shape: f32[32,32], index: 5, kind: input, shape index: {}]   ;;  %s2409_s6 = inlined_call_operand.vmem [shape: f32[1,32], index: 6, kind: input, shape index: {}]   ;;  %s2410_s7 = inlined_call_operand.vmem [shape: f32[32,32], index: 7, kind: input, shape index: {}]   ;;  %s2411_s8 = inlined_call_operand.vmem [shape: f32[1,32], index: 8, kind: input, shape index: {}]   ;;  %s2412_s9 = inlined_call_operand.vmem [shape: f32[32,32], index: 9, kind: input, shape index: {}]   ;;  %s2413_s10 = inlined_call_operand.vmem [shape: f32[1,32], index: 10, kind: input, shape index: {}]   ;;  %s2414_s11 = inlined_call_operand.vmem [shape: f32[32,128], index: 11, kind: input, shape index: {}]   ;;  %s2415_s12 = inlined_call_operand.vmem [shape: f32[1,128], index: 12, kind: input, shape index: {}]   ;;  %s2416_s13 = inlined_call_operand.vmem [shape: s8[128,128], index: 13, kind: input, shape index: {}]   ;;  %s2417_s14 = inlined_call_operand.vmem [shape: f32[8,128], index: 14, kind: output, shape index: {0}]   ;;  %s2418_s15 = inlined_call_operand.hbm [shape: f32[1,1], index: 15, kind: output, shape index: {1}]   ;;  %s2419_s16 = inlined_call_operand.hbm [shape: f32[1,1], index: 16, kind: output, shape index: {2}]  }
   0x1   :  { %2421 = sst [smem:[#allocation14_spill]] %s2403_s0 }
   0x2   :  { %22 = vsyncpa [#allocation7], 0 }
   0x3   :  { %23 = vsyncpa [#allocation9], 0  ;;  %v1851_v0 = vld [vmem:[%s2416_s13] sm:$0xff]  ;;  %v1856_v1 = vld [vmem:[%s2416_s13 + $0x8] sm:$0xff]  ;;  %s2422_s0 = sld [smem:[#allocation14_spill]]  ;;  %v1759_v6 = vmov 0  }
   0x4   :  { %v1861_v2 = vld [vmem:[%s2416_s13 + $0x10] sm:$0xff]  ;;  %v1866_v3 = vld [vmem:[%s2416_s13 + $0x18] sm:$0xff]  ;;  %1718 = vset.pattern.permute.xlu1 %v1759_v6  ;;  %1717 = vset.pattern.permute.xlu0 %v1759_v6 }
   0x5   :  { %1719 = vset.pattern.permute.xlu2 %v1759_v6 }
   0x9   :  { %v76_v4 = vld [vmem:[%s2422_s0 + $0x10] sm:$0xff]  ;;  %v74_v5 = vld [vmem:[%s2422_s0] sm:$0xff] }
   0xa   :  { %99 = vperm.xlu1 %1718, %v76_v4   ;;  %93 = vperm.xlu0 %1717, %v74_v5   ;;  %v78_v7 = vld [vmem:[%s2422_s0 + $0x20] sm:$0xff] }
   0xb   :  { %105 = vperm.xlu2 %1719, %v78_v7  }
   0xc   :  { %73 = vsyncadd [#allocation5], 512  ;;  %v77_v8 = vld [vmem:[%s2422_s0 + $0x18] sm:$0xff]  ;;  %v75_v9 = vld [vmem:[%s2422_s0 + $0x8] sm:$0xff]  ;;  %v90_v25 = vlaneseq  ;;  %v1760_v28 = vmov 0.0   ;;  %vm194_vm1 = vcmask 130048  }
   0xd   :  { %v79_v10 = vld [vmem:[%s2422_s0 + $0x28] sm:$0xff]  ;;  %v81_v12 = vld [vmem:[%s2422_s0 + $0x38] sm:$0xff]  ;;  %v80_v13 = vld [vmem:[%s2422_s0 + $0x30] sm:$0xff] }
   0xe   :  { %v189_v11 = vld [vmem:[%s2406_s3 + $0x8] sm:$0xff]  ;;  %v82_v14 = vld [vmem:[%s2422_s0 + $0x40] sm:$0xff]  ;;  %v84_v15 = vld [vmem:[%s2422_s0 + $0x50] sm:$0xff]  ;;  %v1922_v26 = vand.u32 127, %v90_v25 }
   0xf   :  { %257 = vmatpush.msra.mxu0 %v189_v11  ;;  %v83_v16 = vld [vmem:[%s2422_s0 + $0x48] sm:$0xff]  ;;  %v85_v17 = vld [vmem:[%s2422_s0 + $0x58] sm:$0xff]  ;;  %v86_v19 = vld [vmem:[%s2422_s0 + $0x60] sm:$0xff] }
  0x10   :  { %v87_v18 = vld [vmem:[%s2422_s0 + $0x68] sm:$0xff]  ;;  %v88_v20 = vld [vmem:[%s2422_s0 + $0x70] sm:$0xff]  ;;  %v89_v21 = vld [vmem:[%s2422_s0 + $0x78] sm:$0xff] }
  0x11   :  { %v188_v22 = vld [vmem:[%s2406_s3] sm:$0xff] }
  0x12   :  { %102 = vperm.xlu1 %1718, %v77_v8   ;;  %96 = vperm.xlu0 %1717, %v75_v9   ;;  %v1975_v58 = vld [vmem:[%s2407_s4] ss:$0 sm:$0xff] }
  0x13   :  { %108 = vperm.xlu2 %1719, %v79_v10   ;;  %258 = vmatpush.msra.mxu0 %v188_v22 }
  0x1a   :  { %114 = vperm.xlu1 %1718, %v81_v12   ;;  %111 = vperm.xlu0 %1717, %v80_v13  }
  0x1b   :  { %117 = vperm.xlu2 %1719, %v82_v14  }
  0x22   :  { %123 = vperm.xlu1 %1718, %v84_v15   ;;  %120 = vperm.xlu0 %1717, %v83_v16  }
  0x23   :  { %126 = vperm.xlu2 %1719, %v85_v17  }
  0x2a   :  { %132 = vperm.xlu1 %1718, %v87_v18   ;;  %129 = vperm.xlu0 %1717, %v86_v19  }
  0x2b   :  { %135 = vperm.xlu2 %1719, %v88_v20  }
  0x32   :  { %138 = vperm.xlu0 %1717, %v89_v21  }
  0x65   :  { %v106_v23 = vpop.permute.xlu2 %105 }
  0x66   :  { %vm144_vm10 = vcmp.eq.s32.totalorder %v106_v23, %v1922_v26 }
  0x67   :  { %v1613_v48 = vsel %vm144_vm10, 1.0, %v1760_v28 }
  0x6d   :  { %v109_v24 = vpop.permute.xlu2 %108 }
  0x6e   :  { %vm145_vm13 = vcmp.eq.s32.totalorder %v109_v24, %v1922_v26 }
  0x6f   :  { %v1614_v54 = vsel %vm145_vm13, 1.0, %v1760_v28 }
  0x75   :  { %v118_v27 = vpop.permute.xlu2 %117 }
  0x76   :  { %vm148_vm0 = vcmp.eq.s32.totalorder %v118_v27, %v1922_v26 }
  0x77   :  { %v1617_v29 = vsel %vm148_vm0, 1.0, %v1760_v28 }
  0x7c   :  { %v100_v30 = vpop.permute.xlu1 %99  ;;  %v94_v31 = vpop.permute.xlu0 %93 }
  0x7d   :  { %vm140_vm2 = vcmp.eq.s32.totalorder %v94_v31, %v1922_v26  ;;  %v127_v33 = vpop.permute.xlu2 %126  ;;  %vm142_vm6 = vcmp.eq.s32.totalorder %v100_v30, %v1922_v26 }
  0x7e   :  { %v1609_v32 = vsel %vm140_vm2, 1.0, %v1760_v28  ;;  %vm151_vm3 = vcmp.eq.s32.totalorder %v127_v33, %v1922_v26  ;;  %v1611_v40 = vsel %vm142_vm6, 1.0, %v1760_v28  ;;  %vm308_vm2 = vcmask 261120  }
  0x7f   :  { %1625 = vmatmul.msk.f32.vlgmr.msra.gmra.mxu0 %vm194_vm1, %v1609_v32  ;;  %v1620_v34 = vsel %vm151_vm3, 1.0, %v1760_v28 }
  0x84   :  { %v103_v35 = vpop.permute.xlu1 %102  ;;  %v97_v36 = vpop.permute.xlu0 %96 }
  0x85   :  { %vm141_vm4 = vcmp.eq.s32.totalorder %v97_v36, %v1922_v26  ;;  %v136_v38 = vpop.permute.xlu2 %135  ;;  %vm143_vm7 = vcmp.eq.s32.totalorder %v103_v35, %v1922_v26 }
  0x86   :  { %v1610_v37 = vsel %vm141_vm4, 1.0, %v1760_v28  ;;  %vm154_vm5 = vcmp.eq.s32.totalorder %v136_v38, %v1922_v26  ;;  %v1612_v45 = vsel %vm143_vm7, 1.0, %v1760_v28 }
  0x87   :  { %1626 = vmatmul.msk.f32.gmra.mxu0 %vm194_vm1, %v1610_v37  ;;  %v1623_v39 = vsel %vm154_vm5, 1.0, %v1760_v28 }
  0x8c   :  { %v115_v41 = vpop.permute.xlu1 %114  ;;  %v112_v42 = vpop.permute.xlu0 %111 }
  0x8d   :  { %vm146_vm15 = vcmp.eq.s32.totalorder %v112_v42, %v1922_v26  ;;  %vm147_vm0 = vcmp.eq.s32.totalorder %v115_v41, %v1922_v26 }
  0x8e   :  { %v1615_v56 = vsel %vm146_vm15, 1.0, %v1760_v28  ;;  %v1616_v57 = vsel %vm147_vm0, 1.0, %v1760_v28 }
  0x8f   :  { %1627 = vmatmul.msk.f32.gmra.mxu0 %vm194_vm1, %v1611_v40 }
  0x94   :  { %v124_v43 = vpop.permute.xlu1 %123  ;;  %v121_v44 = vpop.permute.xlu0 %120 }
  0x95   :  { %vm150_vm8 = vcmp.eq.s32.totalorder %v124_v43, %v1922_v26  ;;  %vm149_vm9 = vcmp.eq.s32.totalorder %v121_v44, %v1922_v26 }
  0x96   :  { %v1619_v46 = vsel %vm150_vm8, 1.0, %v1760_v28  ;;  %v1618_v47 = vsel %vm149_vm9, 1.0, %v1760_v28 }
  0x97   :  { %1628 = vmatmul.msk.f32.gmra.mxu0 %vm194_vm1, %v1612_v45 }
  0x9c   :  { %v133_v49 = vpop.permute.xlu1 %132  ;;  %v130_v50 = vpop.permute.xlu0 %129 }
  0x9d   :  { %vm153_vm11 = vcmp.eq.s32.totalorder %v133_v49, %v1922_v26  ;;  %vm152_vm12 = vcmp.eq.s32.totalorder %v130_v50, %v1922_v26 }
  0x9e   :  { %v1622_v51 = vsel %vm153_vm11, 1.0, %v1760_v28  ;;  %v1621_v52 = vsel %vm152_vm12, 1.0, %v1760_v28 }
  0x9f   :  { %1629 = vmatmul.msk.f32.gmra.mxu0 %vm194_vm1, %v1613_v48 }
  0xa4   :  { %v139_v53 = vpop.permute.xlu0 %138 }
  0xa5   :  { %vm155_vm14 = vcmp.eq.s32.totalorder %v139_v53, %v1922_v26 }
  0xa6   :  { %v1624_v55 = vsel %vm155_vm14, 1.0, %v1760_v28 }
  0xa7   :  { %1630 = vmatmul.msk.f32.gmra.mxu0 %vm194_vm1, %v1614_v54 }
  0xaf   :  { %1631 = vmatmul.msk.f32.gmra.mxu0 %vm194_vm1, %v1615_v56 }
  0xb7   :  { %1632 = vmatmul.msk.f32.gmra.mxu0 %vm194_vm1, %v1616_v57 }
  0xbf   :  { %1633 = vmatmul.msk.f32.gmra.mxu0 %vm194_vm1, %v1617_v29 }
  0xc7   :  { %1634 = vmatmul.msk.f32.gmra.mxu0 %vm194_vm1, %v1618_v47 }
  0xcf   :  { %1635 = vmatmul.msk.f32.gmra.mxu0 %vm194_vm1, %v1619_v46 }
  0xd7   :  { %1636 = vmatmul.msk.f32.gmra.mxu0 %vm194_vm1, %v1620_v34 }
  0xdf   :  { %1637 = vmatmul.msk.f32.gmra.mxu0 %vm194_vm1, %v1621_v52 }
  0xe7   :  { %1638 = vmatmul.msk.f32.gmra.mxu0 %vm194_vm1, %v1622_v51 }
  0xef   :  { %1639 = vmatmul.msk.f32.gmra.mxu0 %vm194_vm1, %v1623_v39 }
  0xf7   :  { %1640 = vmatmul.msk.f32.gmra.mxu0 %vm194_vm1, %v1624_v55 }
  0xfc   :  { %v260_v59 = vpop.f32.mrf.mxu0 }
  0xfd   :  { %v261_v60 = vadd.f32 %v1975_v58, %v260_v59 }
  0xff   :  { %309 = vst.msk [vmem:[#allocation3] sm:$0xff] %vm308_vm2, %v261_v60  ;;  %v325_v61 = vmax.f32 %v261_v60, 0.0 }
 0x101   :  { %341 = vst.msk [vmem:[#allocation4] sm:$0xff] %vm308_vm2, %v325_v61 }
 0x104   :  { %v263_v62 = vpop.f32.mrf.mxu0 }
 0x105   :  { %v264_v63 = vadd.f32 %v1975_v58, %v263_v62 }
 0x107   :  { %310 = vst.msk [vmem:[#allocation3 + $0x8] sm:$0xff] %vm308_vm2, %v264_v63  ;;  %v326_v4 = vmax.f32 %v264_v63, 0.0 }
 0x109   :  { %342 = vst.msk [vmem:[#allocation4 + $0x8] sm:$0xff] %vm308_vm2, %v326_v4 }
 0x10c   :  { %v266_v5 = vpop.f32.mrf.mxu0 }
 0x10d   :  { %v267_v6 = vadd.f32 %v1975_v58, %v266_v5 }
 0x10f   :  { %311 = vst.msk [vmem:[#allocation3 + $0x10] sm:$0xff] %vm308_vm2, %v267_v6  ;;  %v327_v7 = vmax.f32 %v267_v6, 0.0 }
 0x111   :  { %343 = vst.msk [vmem:[#allocation4 + $0x10] sm:$0xff] %vm308_vm2, %v327_v7 }
 0x114   :  { %v269_v8 = vpop.f32.mrf.mxu0 }
 0x115   :  { %v270_v9 = vadd.f32 %v1975_v58, %v269_v8 }
 0x117   :  { %312 = vst.msk [vmem:[#allocation3 + $0x18] sm:$0xff] %vm308_vm2, %v270_v9  ;;  %v328_v10 = vmax.f32 %v270_v9, 0.0 }
 0x119   :  { %344 = vst.msk [vmem:[#allocation4 + $0x18] sm:$0xff] %vm308_vm2, %v328_v10 }
 0x11c   :  { %v272_v11 = vpop.f32.mrf.mxu0 }
 0x11d   :  { %v273_v12 = vadd.f32 %v1975_v58, %v272_v11 }
 0x11f   :  { %313 = vst.msk [vmem:[#allocation3 + $0x20] sm:$0xff] %vm308_vm2, %v273_v12  ;;  %v329_v13 = vmax.f32 %v273_v12, 0.0 }
 0x121   :  { %345 = vst.msk [vmem:[#allocation4 + $0x20] sm:$0xff] %vm308_vm2, %v329_v13 }
 0x124   :  { %v275_v14 = vpop.f32.mrf.mxu0 }
 0x125   :  { %v276_v15 = vadd.f32 %v1975_v58, %v275_v14 }
 0x127   :  { %314 = vst.msk [vmem:[#allocation3 + $0x28] sm:$0xff] %vm308_vm2, %v276_v15  ;;  %v330_v16 = vmax.f32 %v276_v15, 0.0 }
 0x129   :  { %346 = vst.msk [vmem:[#allocation4 + $0x28] sm:$0xff] %vm308_vm2, %v330_v16 }
 0x12c   :  { %v278_v17 = vpop.f32.mrf.mxu0 }
 0x12d   :  { %v279_v18 = vadd.f32 %v1975_v58, %v278_v17 }
 0x12f   :  { %315 = vst.msk [vmem:[#allocation3 + $0x30] sm:$0xff] %vm308_vm2, %v279_v18  ;;  %v331_v19 = vmax.f32 %v279_v18, 0.0 }
 0x131   :  { %347 = vst.msk [vmem:[#allocation4 + $0x30] sm:$0xff] %vm308_vm2, %v331_v19 }
 0x134   :  { %v281_v20 = vpop.f32.mrf.mxu0 }
 0x135   :  { %v282_v21 = vadd.f32 %v1975_v58, %v281_v20 }
 0x137   :  { %316 = vst.msk [vmem:[#allocation3 + $0x38] sm:$0xff] %vm308_vm2, %v282_v21  ;;  %v332_v22 = vmax.f32 %v282_v21, 0.0 }
 0x139   :  { %348 = vst.msk [vmem:[#allocation4 + $0x38] sm:$0xff] %vm308_vm2, %v332_v22 }
 0x13c   :  { %v284_v23 = vpop.f32.mrf.mxu0 }
 0x13d   :  { %v285_v24 = vadd.f32 %v1975_v58, %v284_v23 }
 0x13f   :  { %317 = vst.msk [vmem:[#allocation3 + $0x40] sm:$0xff] %vm308_vm2, %v285_v24  ;;  %v333_v25 = vmax.f32 %v285_v24, 0.0 }
 0x141   :  { %349 = vst.msk [vmem:[#allocation4 + $0x40] sm:$0xff] %vm308_vm2, %v333_v25 }
 0x144   :  { %v287_v27 = vpop.f32.mrf.mxu0 }
 0x145   :  { %v288_v29 = vadd.f32 %v1975_v58, %v287_v27 }
 0x147   :  { %318 = vst.msk [vmem:[#allocation3 + $0x48] sm:$0xff] %vm308_vm2, %v288_v29  ;;  %v334_v30 = vmax.f32 %v288_v29, 0.0 }
 0x149   :  { %350 = vst.msk [vmem:[#allocation4 + $0x48] sm:$0xff] %vm308_vm2, %v334_v30 }
 0x14c   :  { %v290_v31 = vpop.f32.mrf.mxu0 }
 0x14d   :  { %v291_v32 = vadd.f32 %v1975_v58, %v290_v31 }
 0x14f   :  { %319 = vst.msk [vmem:[#allocation3 + $0x50] sm:$0xff] %vm308_vm2, %v291_v32  ;;  %v335_v33 = vmax.f32 %v291_v32, 0.0 }
 0x151   :  { %351 = vst.msk [vmem:[#allocation4 + $0x50] sm:$0xff] %vm308_vm2, %v335_v33 }
 0x154   :  { %v293_v34 = vpop.f32.mrf.mxu0 }
 0x155   :  { %v294_v35 = vadd.f32 %v1975_v58, %v293_v34 }
 0x157   :  { %320 = vst.msk [vmem:[#allocation3 + $0x58] sm:$0xff] %vm308_vm2, %v294_v35  ;;  %v336_v36 = vmax.f32 %v294_v35, 0.0 }
 0x159   :  { %352 = vst.msk [vmem:[#allocation4 + $0x58] sm:$0xff] %vm308_vm2, %v336_v36 }
 0x15c   :  { %v296_v37 = vpop.f32.mrf.mxu0 }
 0x15d   :  { %v297_v38 = vadd.f32 %v1975_v58, %v296_v37 }
 0x15f   :  { %321 = vst.msk [vmem:[#allocation3 + $0x60] sm:$0xff] %vm308_vm2, %v297_v38  ;;  %v337_v39 = vmax.f32 %v297_v38, 0.0 }
 0x161   :  { %353 = vst.msk [vmem:[#allocation4 + $0x60] sm:$0xff] %vm308_vm2, %v337_v39 }
 0x164   :  { %v299_v40 = vpop.f32.mrf.mxu0 }
 0x165   :  { %v300_v41 = vadd.f32 %v1975_v58, %v299_v40 }
 0x167   :  { %322 = vst.msk [vmem:[#allocation3 + $0x68] sm:$0xff] %vm308_vm2, %v300_v41  ;;  %v338_v42 = vmax.f32 %v300_v41, 0.0 }
 0x169   :  { %354 = vst.msk [vmem:[#allocation4 + $0x68] sm:$0xff] %vm308_vm2, %v338_v42 }
 0x16c   :  { %v302_v43 = vpop.f32.mrf.mxu0 }
 0x16d   :  { %v303_v44 = vadd.f32 %v1975_v58, %v302_v43 }
 0x16f   :  { %323 = vst.msk [vmem:[#allocation3 + $0x70] sm:$0xff] %vm308_vm2, %v303_v44  ;;  %v339_v45 = vmax.f32 %v303_v44, 0.0 }
 0x171   :  { %355 = vst.msk [vmem:[#allocation4 + $0x70] sm:$0xff] %vm308_vm2, %v339_v45 }
 0x174   :  { %v305_v46 = vpop.f32.mrf.mxu0 }
 0x175   :  { %v306_v47 = vadd.f32 %v1975_v58, %v305_v46 }
 0x177   :  { %324 = vst.msk [vmem:[#allocation3 + $0x78] sm:$0xff] %vm308_vm2, %v306_v47  ;;  %v340_v48 = vmax.f32 %v306_v47, 0.0 }
 0x179   :  { %356 = vst.msk [vmem:[#allocation4 + $0x78] sm:$0xff] %vm308_vm2, %v340_v48 }
 0x17a   :  { %1753 = dma.done.wait [#allocation5], 512 }
 0x17b   :  { %1754 = vsyncadd [#allocation5], 4294966784  ;;  %v364_v49 = vld [vmem:[%s2408_s5 + $0x18] sm:$0xff]  ;;  %v363_v50 = vld [vmem:[%s2408_s5 + $0x10] sm:$0xff]  ;;  %v507_v33 = vunpack.c.0.s8 %v1851_v0  ;;  %v508_v34 = vunpack.c.1.s8 %v1851_v0  ;;  %v509_v40 = vunpack.c.2.s8 %v1851_v0  ;;  %v510_v41 = vunpack.c.3.s8 %v1851_v0  ;;  %s1573_s13 = sshll.u32 %s2418_s15, 4  ;;  %s1761_s21 = smov [#allocation6]   ;;  %s1574_s13 = int_to_ptr.hbm [resolvable:$true] %s1573_s13 }
 0x17c   :  { %442 = vmatpush.msra.mxu1 %v364_v49  ;;  %739 = vmatpush.msra.mxu3 %v364_v49  ;;  %v362_v51 = vld [vmem:[%s2408_s5 + $0x8] sm:$0xff]  ;;  %v361_v52 = vld [vmem:[%s2408_s5] sm:$0xff]  ;;  %v368_v55 = vld [vmem:[#allocation4 + $0x10] sm:$0xff]  ;;  %v511_v45 = vunpack.c.0.s8 %v1856_v1  ;;  %v512_v46 = vunpack.c.1.s8 %v1856_v1  ;;  %v514_v0 = vunpack.c.3.s8 %v1856_v1  ;;  %vm1549_vm6 = vcmask 7168   ;;  %s1582_s23 = sshll.u32 %s2419_s16, 4  ;;  %s1762_s15 = smov [#allocation8]   ;;  %s1583_s23 = int_to_ptr.hbm [resolvable:$true] %s1582_s23 }
 0x17d   :  { %v366_v53 = vld [vmem:[#allocation4] sm:$0xff]  ;;  %v367_v54 = vld [vmem:[#allocation4 + $0x8] sm:$0xff]  ;;  %v369_v56 = vld [vmem:[#allocation4 + $0x18] sm:$0xff]  ;;  %v523_v36 = vcvt.s32.f32 %v507_v33  ;;  %v524_v37 = vcvt.s32.f32 %v508_v34  ;;  %v525_v42 = vcvt.s32.f32 %v509_v40  ;;  %v526_v43 = vcvt.s32.f32 %v510_v41 }
 0x17e   :  { %443 = vmatpush.msra.mxu1 %v363_v50  ;;  %740 = vmatpush.msra.mxu3 %v363_v50  ;;  %v370_v57 = vld [vmem:[#allocation4 + $0x20] sm:$0xff]  ;;  %v371_v58 = vld [vmem:[#allocation4 + $0x28] sm:$0xff]  ;;  %v372_v59 = vld [vmem:[#allocation4 + $0x30] sm:$0xff]  ;;  %v527_v47 = vcvt.s32.f32 %v511_v45  ;;  %v528_v48 = vcvt.s32.f32 %v512_v46 }
 0x17f   :  { %v373_v60 = vld [vmem:[#allocation4 + $0x38] sm:$0xff]  ;;  %v374_v61 = vld [vmem:[#allocation4 + $0x40] sm:$0xff]  ;;  %v375_v62 = vld [vmem:[#allocation4 + $0x48] sm:$0xff]  ;;  %v2055_v39 = vpack.c.bf16 %v524_v37, %v523_v36  ;;  %v2060_v44 = vpack.c.bf16 %v526_v43, %v525_v42 }
 0x180   :  { %444 = vmatpush.msra.mxu1 %v362_v51  ;;  %741 = vmatpush.msra.mxu3 %v362_v51  ;;  %v376_v63 = vld [vmem:[#allocation4 + $0x50] sm:$0xff]  ;;  %v377_v4 = vld [vmem:[#allocation4 + $0x58] sm:$0xff]  ;;  %v378_v5 = vld [vmem:[#allocation4 + $0x60] sm:$0xff] }
 0x181   :  { %v379_v6 = vld [vmem:[#allocation4 + $0x68] sm:$0xff]  ;;  %v380_v7 = vld [vmem:[#allocation4 + $0x70] sm:$0xff]  ;;  %v381_v8 = vld [vmem:[#allocation4 + $0x78] sm:$0xff] }
 0x182   :  { %445 = vmatpush.msra.mxu1 %v361_v52  ;;  %742 = vmatpush.msra.mxu3 %v361_v52  ;;  %v2127_v46 = vld [vmem:[#allocation3 + $0x28] sm:$0xff] }
 0x183   :  { %1641 = vmatmul.msk.f32.vlgmr.msra.gmra.mxu1 %vm308_vm2, %v366_v53 }
 0x184   :  { %1033 = vmatpush.msrb.mxu1 %v364_v49  ;;  %v2065_v49 = vpack.c.bf16 %v528_v48, %v527_v47 }
 0x186   :  { %1034 = vmatpush.msrb.mxu1 %v363_v50  ;;  %v513_v50 = vunpack.c.2.s8 %v1856_v1  ;;  %v518_v1 = vunpack.c.3.s8 %v1861_v2 }
 0x188   :  { %1035 = vmatpush.msrb.mxu1 %v362_v51  ;;  %v529_v51 = vcvt.s32.f32 %v513_v50 }
 0x18a   :  { %1036 = vmatpush.msrb.mxu1 %v361_v52  ;;  %v530_v52 = vcvt.s32.f32 %v514_v0 }
 0x18b   :  { %1642 = vmatmul.msk.f32.gmra.mxu1 %vm308_vm2, %v367_v54  ;;  %v515_v54 = vunpack.c.0.s8 %v1861_v2 }
 0x18c   :  { %v2070_v53 = vpack.c.bf16 %v530_v52, %v529_v51  ;;  %v2133_v52 = vld [vmem:[#allocation3 + $0x30] sm:$0xff] }
 0x193   :  { %1643 = vmatmul.msk.f32.gmra.mxu1 %vm308_vm2, %v368_v55  ;;  %v516_v55 = vunpack.c.1.s8 %v1861_v2 }
 0x19b   :  { %1644 = vmatmul.msk.f32.gmra.mxu1 %vm308_vm2, %v369_v56  ;;  %v531_v56 = vcvt.s32.f32 %v515_v54 }
 0x1a3   :  { %1645 = vmatmul.msk.f32.gmra.mxu1 %vm308_vm2, %v370_v57  ;;  %v532_v57 = vcvt.s32.f32 %v516_v55 }
 0x1ab   :  { %1646 = vmatmul.msk.f32.gmra.mxu1 %vm308_vm2, %v371_v58  ;;  %v2075_v58 = vpack.c.bf16 %v532_v57, %v531_v56 }
 0x1b3   :  { %1647 = vmatmul.msk.f32.gmra.mxu1 %vm308_vm2, %v372_v59  ;;  %v517_v59 = vunpack.c.2.s8 %v1861_v2  ;;  %v522_v2 = vunpack.c.3.s8 %v1866_v3 }
 0x1bb   :  { %1648 = vmatmul.msk.f32.gmra.mxu1 %vm308_vm2, %v373_v60  ;;  %v533_v60 = vcvt.s32.f32 %v517_v59 }
 0x1c3   :  { %1649 = vmatmul.msk.f32.gmra.mxu1 %vm308_vm2, %v374_v61  ;;  %v534_v61 = vcvt.s32.f32 %v518_v1  ;;  %v2139_v1 = vld [vmem:[#allocation3 + $0x38] sm:$0xff] }
 0x1cb   :  { %1650 = vmatmul.msk.f32.gmra.mxu1 %vm308_vm2, %v375_v62  ;;  %v2080_v62 = vpack.c.bf16 %v534_v61, %v533_v60 }
 0x1d3   :  { %1651 = vmatmul.msk.f32.gmra.mxu1 %vm308_vm2, %v376_v63  ;;  %v519_v63 = vunpack.c.0.s8 %v1866_v3 }
 0x1db   :  { %1652 = vmatmul.msk.f32.gmra.mxu1 %vm308_vm2, %v377_v4  ;;  %v520_v4 = vunpack.c.1.s8 %v1866_v3 }
 0x1e3   :  { %1653 = vmatmul.msk.f32.gmra.mxu1 %vm308_vm2, %v378_v5  ;;  %v535_v5 = vcvt.s32.f32 %v519_v63 }
 0x1eb   :  { %1654 = vmatmul.msk.f32.gmra.mxu1 %vm308_vm2, %v379_v6  ;;  %v536_v6 = vcvt.s32.f32 %v520_v4 }
 0x1f3   :  { %1655 = vmatmul.msk.f32.gmra.mxu1 %vm308_vm2, %v380_v7  ;;  %v2085_v7 = vpack.c.bf16 %v536_v6, %v535_v5  ;;  %v2145_v6 = vld [vmem:[#allocation3 + $0x40] sm:$0xff] }
 0x1fb   :  { %1656 = vmatmul.msk.f32.gmra.mxu1 %vm308_vm2, %v381_v8  ;;  %v521_v8 = vunpack.c.2.s8 %v1866_v3 }
 0x200   :  { %v447_v9 = vpop.f32.mrf.mxu1 }
 0x208   :  { %v450_v10 = vpop.f32.mrf.mxu1 }
 0x209   :  { %v495_v38 = vpack.c.bf16 %v450_v10, %v447_v9  ;;  %v537_v9 = vcvt.s32.f32 %v521_v8  ;;  %v538_v10 = vcvt.s32.f32 %v522_v2 }
 0x210   :  { %v453_v11 = vpop.f32.mrf.mxu1 }
 0x218   :  { %v456_v12 = vpop.f32.mrf.mxu1 }
 0x219   :  { %v496_v35 = vpack.c.bf16 %v456_v12, %v453_v11  ;;  %v2090_v11 = vpack.c.bf16 %v538_v10, %v537_v9  ;;  %v2096_v12 = vld [vmem:[%s2409_s6] ss:$0 sm:$0xff] }
 0x220   :  { %v459_v13 = vpop.f32.mrf.mxu1 }
 0x228   :  { %v462_v14 = vpop.f32.mrf.mxu1 }
 0x229   :  { %v497_v32 = vpack.c.bf16 %v462_v14, %v459_v13  ;;  %v2098_v14 = vld [vmem:[#allocation3] sm:$0xff] }
 0x230   :  { %v465_v15 = vpop.f32.mrf.mxu1 }
 0x238   :  { %v468_v16 = vpop.f32.mrf.mxu1 }
 0x239   :  { %v498_v31 = vpack.c.bf16 %v468_v16, %v465_v15 }
 0x240   :  { %v471_v17 = vpop.f32.mrf.mxu1 }
 0x248   :  { %v474_v18 = vpop.f32.mrf.mxu1 }
 0x249   :  { %v499_v30 = vpack.c.bf16 %v474_v18, %v471_v17  ;;  %v2103_v18 = vld [vmem:[#allocation3 + $0x8] sm:$0xff] }
 0x250   :  { %v477_v19 = vpop.f32.mrf.mxu1 }
 0x258   :  { %v480_v20 = vpop.f32.mrf.mxu1 }
 0x259   :  { %v500_v29 = vpack.c.bf16 %v480_v20, %v477_v19 }
 0x260   :  { %v483_v21 = vpop.f32.mrf.mxu1 }
 0x268   :  { %v486_v22 = vpop.f32.mrf.mxu1 }
 0x269   :  { %v501_v27 = vpack.c.bf16 %v486_v22, %v483_v21 }
 0x270   :  { %v489_v23 = vpop.f32.mrf.mxu1 }
 0x278   :  { %v492_v24 = vpop.f32.mrf.mxu1 }
 0x279   :  { %v502_v25 = vpack.c.bf16 %v492_v24, %v489_v23  ;;  %v2109_v24 = vld [vmem:[#allocation3 + $0x10] sm:$0xff] }
 0x27b   :  { %550 = vmatpush.bf16.msra.mxu2 %v502_v25 }
 0x27f   :  { %551 = vmatpush.bf16.msra.mxu2 %v501_v27 }
 0x283   :  { %552 = vmatpush.bf16.msra.mxu2 %v500_v29 }
 0x287   :  { %553 = vmatpush.bf16.msra.mxu2 %v499_v30 }
 0x28b   :  { %554 = vmatpush.bf16.msra.mxu2 %v498_v31 }
 0x28f   :  { %555 = vmatpush.bf16.msra.mxu2 %v497_v32  ;;  %v2115_v32 = vld [vmem:[#allocation3 + $0x18] sm:$0xff] }
 0x293   :  { %556 = vmatpush.bf16.msra.mxu2 %v496_v35 }
 0x297   :  { %557 = vmatpush.bf16.msra.mxu2 %v495_v38  ;;  %v2121_v38 = vld [vmem:[#allocation3 + $0x20] sm:$0xff] }
 0x29a   :  { %558 = vmatmul.bf16.vlgmr.msra.gmra.mxu2 %v2055_v39 }
 0x2aa   :  { %563 = vmatmul.bf16.gmra.mxu2 %v2060_v44 }
 0x2ba   :  { %568 = vmatmul.bf16.gmra.mxu2 %v2065_v49 }
 0x2ca   :  { %573 = vmatmul.bf16.gmra.mxu2 %v2070_v53 }
 0x2da   :  { %578 = vmatmul.bf16.gmra.mxu2 %v2075_v58 }
 0x2ea   :  { %583 = vmatmul.bf16.gmra.mxu2 %v2080_v62 }
 0x2fa   :  { %588 = vmatmul.bf16.gmra.mxu2 %v2085_v7 }
 0x30a   :  { %593 = vmatmul.bf16.gmra.mxu2 %v2090_v11 }
 0x31d   :  { %v559_v13 = vpop.f32.mrf.mxu2 }
 0x31e   :  { %v560_v15 = vadd.f32 %v2096_v12, %v559_v13 }
 0x320   :  { %v615_v16 = vadd.f32 %v2098_v14, %v560_v15  ;;  %v2151_v15 = vld [vmem:[#allocation3 + $0x48] sm:$0xff] }
 0x322   :  { %v631_v17 = vmax.f32 %v615_v16, 0.0 }
 0x324   :  { %647 = vst.msk [vmem:[#allocation4] sm:$0xff] %vm308_vm2, %v631_v17 }
 0x325   :  { %v561_v3 = vpop.f32.mrf.mxu2 }
 0x326   :  { %v562_v19 = vadd.f32 %v2096_v12, %v561_v3 }
 0x328   :  { %v616_v20 = vadd.f32 %v2103_v18, %v562_v19 }
 0x32a   :  { %v632_v21 = vmax.f32 %v616_v20, 0.0 }
 0x32b   :  { %v663_v22 = vld [vmem:[#allocation4] sm:$0xff] }
 0x32c   :  { %648 = vst.msk [vmem:[#allocation4 + $0x8] sm:$0xff] %vm308_vm2, %v632_v21  ;;  %1657 = vmatmul.msk.f32.vlgmr.msra.gmra.mxu3 %vm308_vm2, %v663_v22  ;;  %v2157_v21 = vld [vmem:[#allocation3 + $0x50] sm:$0xff] }
 0x32d   :  { %v564_v23 = vpop.f32.mrf.mxu2 }
 0x32e   :  { %v565_v25 = vadd.f32 %v2096_v12, %v564_v23 }
 0x330   :  { %v617_v27 = vadd.f32 %v2109_v24, %v565_v25 }
 0x332   :  { %v633_v29 = vmax.f32 %v617_v27, 0.0 }
 0x333   :  { %v664_v30 = vld [vmem:[#allocation4 + $0x8] sm:$0xff] }
 0x334   :  { %649 = vst.msk [vmem:[#allocation4 + $0x10] sm:$0xff] %vm308_vm2, %v633_v29  ;;  %1658 = vmatmul.msk.f32.gmra.mxu3 %vm308_vm2, %v664_v30  ;;  %v2163_v30 = vld [vmem:[#allocation3 + $0x58] sm:$0xff] }
 0x335   :  { %v566_v31 = vpop.f32.mrf.mxu2 }
 0x336   :  { %v567_v33 = vadd.f32 %v2096_v12, %v566_v31 }
 0x338   :  { %v618_v34 = vadd.f32 %v2115_v32, %v567_v33 }
 0x33a   :  { %v634_v35 = vmax.f32 %v618_v34, 0.0 }
 0x33b   :  { %v665_v36 = vld [vmem:[#allocation4 + $0x10] sm:$0xff] }
 0x33c   :  { %650 = vst.msk [vmem:[#allocation4 + $0x18] sm:$0xff] %vm308_vm2, %v634_v35  ;;  %1659 = vmatmul.msk.f32.gmra.mxu3 %vm308_vm2, %v665_v36 }
 0x33d   :  { %v569_v37 = vpop.f32.mrf.mxu2 }
 0x33e   :  { %v570_v40 = vadd.f32 %v2096_v12, %v569_v37  ;;  %v2169_v37 = vld [vmem:[#allocation3 + $0x60] sm:$0xff] }
 0x340   :  { %v619_v41 = vadd.f32 %v2121_v38, %v570_v40 }
 0x342   :  { %v635_v42 = vmax.f32 %v619_v41, 0.0 }
 0x343   :  { %v666_v43 = vld [vmem:[#allocation4 + $0x18] sm:$0xff] }
 0x344   :  { %651 = vst.msk [vmem:[#allocation4 + $0x20] sm:$0xff] %vm308_vm2, %v635_v42  ;;  %1660 = vmatmul.msk.f32.gmra.mxu3 %vm308_vm2, %v666_v43 }
 0x345   :  { %v571_v45 = vpop.f32.mrf.mxu2 }
 0x346   :  { %v572_v47 = vadd.f32 %v2096_v12, %v571_v45 }
 0x348   :  { %v620_v48 = vadd.f32 %v2127_v46, %v572_v47  ;;  %v2175_v47 = vld [vmem:[#allocation3 + $0x68] sm:$0xff] }
 0x34a   :  { %v636_v50 = vmax.f32 %v620_v48, 0.0 }
 0x34b   :  { %v667_v0 = vld [vmem:[#allocation4 + $0x20] sm:$0xff] }
 0x34c   :  { %652 = vst.msk [vmem:[#allocation4 + $0x28] sm:$0xff] %vm308_vm2, %v636_v50  ;;  %1661 = vmatmul.msk.f32.gmra.mxu3 %vm308_vm2, %v667_v0 }
 0x34d   :  { %v574_v51 = vpop.f32.mrf.mxu2 }
 0x34e   :  { %v575_v54 = vadd.f32 %v2096_v12, %v574_v51 }
 0x350   :  { %v621_v55 = vadd.f32 %v2133_v52, %v575_v54 }
 0x352   :  { %v637_v56 = vmax.f32 %v621_v55, 0.0  ;;  %v2181_v55 = vld [vmem:[#allocation3 + $0x70] sm:$0xff] }
 0x353   :  { %v668_v57 = vld [vmem:[#allocation4 + $0x28] sm:$0xff] }
 0x354   :  { %653 = vst.msk [vmem:[#allocation4 + $0x30] sm:$0xff] %vm308_vm2, %v637_v56  ;;  %1662 = vmatmul.msk.f32.gmra.mxu3 %vm308_vm2, %v668_v57 }
 0x355   :  { %v576_v59 = vpop.f32.mrf.mxu2 }
 0x356   :  { %v577_v60 = vadd.f32 %v2096_v12, %v576_v59 }
 0x358   :  { %v622_v61 = vadd.f32 %v2139_v1, %v577_v60 }
 0x35a   :  { %v638_v63 = vmax.f32 %v622_v61, 0.0 }
 0x35b   :  { %v669_v4 = vld [vmem:[#allocation4 + $0x30] sm:$0xff] }
 0x35c   :  { %654 = vst.msk [vmem:[#allocation4 + $0x38] sm:$0xff] %vm308_vm2, %v638_v63  ;;  %1663 = vmatmul.msk.f32.gmra.mxu3 %vm308_vm2, %v669_v4  ;;  %v2187_v63 = vld [vmem:[#allocation3 + $0x78] sm:$0xff] }
 0x35d   :  { %v579_v5 = vpop.f32.mrf.mxu2 }
 0x35e   :  { %v580_v8 = vadd.f32 %v2096_v12, %v579_v5 }
 0x360   :  { %v623_v2 = vadd.f32 %v2145_v6, %v580_v8 }
 0x362   :  { %v639_v9 = vmax.f32 %v623_v2, 0.0 }
 0x363   :  { %v670_v10 = vld [vmem:[#allocation4 + $0x38] sm:$0xff] }
 0x364   :  { %655 = vst.msk [vmem:[#allocation4 + $0x40] sm:$0xff] %vm308_vm2, %v639_v9  ;;  %1664 = vmatmul.msk.f32.gmra.mxu3 %vm308_vm2, %v670_v10 }
 0x365   :  { %v581_v13 = vpop.f32.mrf.mxu2 }
 0x366   :  { %v582_v16 = vadd.f32 %v2096_v12, %v581_v13 }
 0x368   :  { %v624_v17 = vadd.f32 %v2151_v15, %v582_v16 }
 0x36a   :  { %v640_v3 = vmax.f32 %v624_v17, 0.0 }
 0x36b   :  { %v671_v19 = vld [vmem:[#allocation4 + $0x40] sm:$0xff] }
 0x36c   :  { %656 = vst.msk [vmem:[#allocation4 + $0x48] sm:$0xff] %vm308_vm2, %v640_v3  ;;  %1665 = vmatmul.msk.f32.gmra.mxu3 %vm308_vm2, %v671_v19 }
 0x36d   :  { %v584_v20 = vpop.f32.mrf.mxu2 }
 0x36e   :  { %v585_v22 = vadd.f32 %v2096_v12, %v584_v20 }
 0x370   :  { %v625_v23 = vadd.f32 %v2157_v21, %v585_v22 }
 0x372   :  { %v641_v25 = vmax.f32 %v625_v23, 0.0 }
 0x373   :  { %v672_v27 = vld [vmem:[#allocation4 + $0x48] sm:$0xff] }
 0x374   :  { %657 = vst.msk [vmem:[#allocation4 + $0x50] sm:$0xff] %vm308_vm2, %v641_v25  ;;  %1666 = vmatmul.msk.f32.gmra.mxu3 %vm308_vm2, %v672_v27 }
 0x375   :  { %v586_v29 = vpop.f32.mrf.mxu2 }
 0x376   :  { %v587_v31 = vadd.f32 %v2096_v12, %v586_v29 }
 0x378   :  { %v626_v33 = vadd.f32 %v2163_v30, %v587_v31 }
 0x37a   :  { %v642_v34 = vmax.f32 %v626_v33, 0.0 }
 0x37b   :  { %v673_v35 = vld [vmem:[#allocation4 + $0x50] sm:$0xff] }
 0x37c   :  { %658 = vst.msk [vmem:[#allocation4 + $0x58] sm:$0xff] %vm308_vm2, %v642_v34  ;;  %1667 = vmatmul.msk.f32.gmra.mxu3 %vm308_vm2, %v673_v35 }
 0x37d   :  { %v589_v36 = vpop.f32.mrf.mxu2 }
 0x37e   :  { %v590_v40 = vadd.f32 %v2096_v12, %v589_v36 }
 0x380   :  { %v627_v41 = vadd.f32 %v2169_v37, %v590_v40 }
 0x382   :  { %v643_v42 = vmax.f32 %v627_v41, 0.0 }
 0x383   :  { %v674_v43 = vld [vmem:[#allocation4 + $0x58] sm:$0xff] }
 0x384   :  { %659 = vst.msk [vmem:[#allocation4 + $0x60] sm:$0xff] %vm308_vm2, %v643_v42  ;;  %1668 = vmatmul.msk.f32.gmra.mxu3 %vm308_vm2, %v674_v43 }
 0x385   :  { %v591_v45 = vpop.f32.mrf.mxu2 }
 0x386   :  { %v592_v48 = vadd.f32 %v2096_v12, %v591_v45 }
 0x388   :  { %v628_v50 = vadd.f32 %v2175_v47, %v592_v48 }
 0x38a   :  { %v644_v0 = vmax.f32 %v628_v50, 0.0 }
 0x38b   :  { %v675_v51 = vld [vmem:[#allocation4 + $0x60] sm:$0xff] }
 0x38c   :  { %660 = vst.msk [vmem:[#allocation4 + $0x68] sm:$0xff] %vm308_vm2, %v644_v0  ;;  %1669 = vmatmul.msk.f32.gmra.mxu3 %vm308_vm2, %v675_v51 }
 0x38d   :  { %v594_v54 = vpop.f32.mrf.mxu2 }
 0x38e   :  { %v595_v56 = vadd.f32 %v2096_v12, %v594_v54 }
 0x390   :  { %v629_v57 = vadd.f32 %v2181_v55, %v595_v56 }
 0x392   :  { %v645_v59 = vmax.f32 %v629_v57, 0.0 }
 0x393   :  { %v676_v60 = vld [vmem:[#allocation4 + $0x68] sm:$0xff] }
 0x394   :  { %661 = vst.msk [vmem:[#allocation4 + $0x70] sm:$0xff] %vm308_vm2, %v645_v59  ;;  %1670 = vmatmul.msk.f32.gmra.mxu3 %vm308_vm2, %v676_v60 }
 0x395   :  { %v596_v61 = vpop.f32.mrf.mxu2 }
 0x396   :  { %v597_v4 = vadd.f32 %v2096_v12, %v596_v61 }
 0x398   :  { %v630_v5 = vadd.f32 %v2187_v63, %v597_v4 }
 0x39a   :  { %v646_v8 = vmax.f32 %v630_v5, 0.0 }
 0x39b   :  { %v677_v2 = vld [vmem:[#allocation4 + $0x70] sm:$0xff] }
 0x39c   :  { %662 = vst.msk [vmem:[#allocation4 + $0x78] sm:$0xff] %vm308_vm2, %v646_v8  ;;  %1671 = vmatmul.msk.f32.gmra.mxu3 %vm308_vm2, %v677_v2 }
 0x3a3   :  { %v678_v9 = vld [vmem:[#allocation4 + $0x78] sm:$0xff] }
 0x3a4   :  { %1672 = vmatmul.msk.f32.gmra.mxu3 %vm308_vm2, %v678_v9 }
 0x3af   :  { %v744_v10 = vpop.f32.mrf.mxu3 }
 0x3b7   :  { %v747_v13 = vpop.f32.mrf.mxu3 }
 0x3b8   :  { %v792_v50 = vpack.c.bf16 %v747_v13, %v744_v10 }
 0x3bf   :  { %v750_v16 = vpop.f32.mrf.mxu3 }
 0x3c7   :  { %v753_v17 = vpop.f32.mrf.mxu3 }
 0x3c8   :  { %v793_v48 = vpack.c.bf16 %v753_v17, %v750_v16 }
 0x3cf   :  { %v756_v3 = vpop.f32.mrf.mxu3 }
 0x3d7   :  { %v759_v19 = vpop.f32.mrf.mxu3 }
 0x3d8   :  { %v794_v45 = vpack.c.bf16 %v759_v19, %v756_v3 }
 0x3df   :  { %v762_v20 = vpop.f32.mrf.mxu3 }
 0x3e7   :  { %v765_v22 = vpop.f32.mrf.mxu3 }
 0x3e8   :  { %v795_v43 = vpack.c.bf16 %v765_v22, %v762_v20 }
 0x3ef   :  { %v768_v23 = vpop.f32.mrf.mxu3 }
 0x3f7   :  { %v771_v25 = vpop.f32.mrf.mxu3 }
 0x3f8   :  { %v796_v42 = vpack.c.bf16 %v771_v25, %v768_v23 }
 0x3ff   :  { %v774_v27 = vpop.f32.mrf.mxu3 }
 0x407   :  { %v777_v29 = vpop.f32.mrf.mxu3 }
 0x408   :  { %v797_v41 = vpack.c.bf16 %v777_v29, %v774_v27 }
 0x40f   :  { %v780_v31 = vpop.f32.mrf.mxu3 }
 0x417   :  { %v783_v33 = vpop.f32.mrf.mxu3 }
 0x418   :  { %v798_v40 = vpack.c.bf16 %v783_v33, %v780_v31 }
 0x41f   :  { %v786_v34 = vpop.f32.mrf.mxu3 }
 0x427   :  { %v789_v35 = vpop.f32.mrf.mxu3 }
 0x428   :  { %v799_v36 = vpack.c.bf16 %v789_v35, %v786_v34 }
 0x42a   :  { %844 = vmatpush.bf16.msrb.mxu0 %v799_v36 }
 0x42e   :  { %845 = vmatpush.bf16.msrb.mxu0 %v798_v40 }
 0x432   :  { %846 = vmatpush.bf16.msrb.mxu0 %v797_v41 }
 0x436   :  { %847 = vmatpush.bf16.msrb.mxu0 %v796_v42 }
 0x43a   :  { %848 = vmatpush.bf16.msrb.mxu0 %v795_v43 }
 0x43e   :  { %849 = vmatpush.bf16.msrb.mxu0 %v794_v45 }
 0x442   :  { %850 = vmatpush.bf16.msrb.mxu0 %v793_v48 }
 0x446   :  { %851 = vmatpush.bf16.msrb.mxu0 %v792_v50 }
 0x449   :  { %852 = vmatmul.bf16.vlgmr.msrb.gmra.mxu0 %v2055_v39 }
 0x459   :  { %857 = vmatmul.bf16.gmra.mxu0 %v2060_v44 }
 0x469   :  { %862 = vmatmul.bf16.gmra.mxu0 %v2065_v49 }
 0x479   :  { %867 = vmatmul.bf16.gmra.mxu0 %v2070_v53 }
 0x489   :  { %872 = vmatmul.bf16.gmra.mxu0 %v2075_v58 }
 0x499   :  { %877 = vmatmul.bf16.gmra.mxu0 %v2080_v62 }
 0x4a9   :  { %882 = vmatmul.bf16.gmra.mxu0 %v2085_v7 }
 0x4b9   :  { %887 = vmatmul.bf16.gmra.mxu0 %v2090_v11 }
 0x4c6   :  { %v853_v0 = vpop.f32.mrf.mxu0 }
 0x4c7   :  { %v854_v51 = vadd.f32 %v2096_v12, %v853_v0 }
 0x4c9   :  { %v909_v54 = vadd.f32 %v854_v51, %v2098_v14 }
 0x4cb   :  { %v925_v56 = vmax.f32 %v909_v54, 0.0 }
 0x4cd   :  { %941 = vst.msk [vmem:[#allocation4] sm:$0xff] %vm308_vm2, %v925_v56 }
 0x4ce   :  { %v855_v57 = vpop.f32.mrf.mxu0 }
 0x4cf   :  { %v856_v59 = vadd.f32 %v2096_v12, %v855_v57 }
 0x4d1   :  { %v910_v60 = vadd.f32 %v856_v59, %v2103_v18 }
 0x4d3   :  { %v926_v61 = vmax.f32 %v910_v60, 0.0 }
 0x4d4   :  { %v957_v4 = vld [vmem:[#allocation4] sm:$0xff] }
 0x4d5   :  { %942 = vst.msk [vmem:[#allocation4 + $0x8] sm:$0xff] %vm308_vm2, %v926_v61  ;;  %1673 = vmatmul.msk.f32.vlgmr.msrb.gmra.mxu1 %vm308_vm2, %v957_v4 }
 0x4d6   :  { %v858_v5 = vpop.f32.mrf.mxu0 }
 0x4d7   :  { %v859_v8 = vadd.f32 %v2096_v12, %v858_v5 }
 0x4d9   :  { %v911_v2 = vadd.f32 %v859_v8, %v2109_v24 }
 0x4db   :  { %v927_v9 = vmax.f32 %v911_v2, 0.0 }
 0x4dc   :  { %v958_v10 = vld [vmem:[#allocation4 + $0x8] sm:$0xff] }
 0x4dd   :  { %943 = vst.msk [vmem:[#allocation4 + $0x10] sm:$0xff] %vm308_vm2, %v927_v9  ;;  %1674 = vmatmul.msk.f32.gmra.mxu1 %vm308_vm2, %v958_v10 }
 0x4de   :  { %v860_v13 = vpop.f32.mrf.mxu0 }
 0x4df   :  { %v861_v16 = vadd.f32 %v2096_v12, %v860_v13 }
 0x4e1   :  { %v912_v17 = vadd.f32 %v861_v16, %v2115_v32 }
 0x4e3   :  { %v928_v3 = vmax.f32 %v912_v17, 0.0 }
 0x4e4   :  { %v959_v19 = vld [vmem:[#allocation4 + $0x10] sm:$0xff] }
 0x4e5   :  { %944 = vst.msk [vmem:[#allocation4 + $0x18] sm:$0xff] %vm308_vm2, %v928_v3  ;;  %1675 = vmatmul.msk.f32.gmra.mxu1 %vm308_vm2, %v959_v19 }
 0x4e6   :  { %v863_v20 = vpop.f32.mrf.mxu0 }
 0x4e7   :  { %v864_v22 = vadd.f32 %v2096_v12, %v863_v20 }
 0x4e9   :  { %v913_v23 = vadd.f32 %v864_v22, %v2121_v38 }
 0x4eb   :  { %v929_v25 = vmax.f32 %v913_v23, 0.0 }
 0x4ec   :  { %v960_v27 = vld [vmem:[#allocation4 + $0x18] sm:$0xff] }
 0x4ed   :  { %945 = vst.msk [vmem:[#allocation4 + $0x20] sm:$0xff] %vm308_vm2, %v929_v25  ;;  %1676 = vmatmul.msk.f32.gmra.mxu1 %vm308_vm2, %v960_v27 }
 0x4ee   :  { %v865_v29 = vpop.f32.mrf.mxu0 }
 0x4ef   :  { %v866_v31 = vadd.f32 %v2096_v12, %v865_v29 }
 0x4f1   :  { %v914_v33 = vadd.f32 %v866_v31, %v2127_v46 }
 0x4f3   :  { %v930_v34 = vmax.f32 %v914_v33, 0.0 }
 0x4f4   :  { %v961_v35 = vld [vmem:[#allocation4 + $0x20] sm:$0xff] }
 0x4f5   :  { %946 = vst.msk [vmem:[#allocation4 + $0x28] sm:$0xff] %vm308_vm2, %v930_v34  ;;  %1677 = vmatmul.msk.f32.gmra.mxu1 %vm308_vm2, %v961_v35 }
 0x4f6   :  { %v868_v36 = vpop.f32.mrf.mxu0 }
 0x4f7   :  { %v869_v40 = vadd.f32 %v2096_v12, %v868_v36 }
 0x4f9   :  { %v915_v41 = vadd.f32 %v869_v40, %v2133_v52 }
 0x4fb   :  { %v931_v42 = vmax.f32 %v915_v41, 0.0 }
 0x4fc   :  { %v962_v43 = vld [vmem:[#allocation4 + $0x28] sm:$0xff] }
 0x4fd   :  { %947 = vst.msk [vmem:[#allocation4 + $0x30] sm:$0xff] %vm308_vm2, %v931_v42  ;;  %1678 = vmatmul.msk.f32.gmra.mxu1 %vm308_vm2, %v962_v43 }
 0x4fe   :  { %v870_v45 = vpop.f32.mrf.mxu0 }
 0x4ff   :  { %v871_v48 = vadd.f32 %v2096_v12, %v870_v45 }
 0x501   :  { %v916_v50 = vadd.f32 %v871_v48, %v2139_v1 }
 0x503   :  { %v932_v0 = vmax.f32 %v916_v50, 0.0 }
 0x504   :  { %v963_v51 = vld [vmem:[#allocation4 + $0x30] sm:$0xff] }
 0x505   :  { %948 = vst.msk [vmem:[#allocation4 + $0x38] sm:$0xff] %vm308_vm2, %v932_v0  ;;  %1679 = vmatmul.msk.f32.gmra.mxu1 %vm308_vm2, %v963_v51 }
 0x506   :  { %v873_v54 = vpop.f32.mrf.mxu0 }
 0x507   :  { %v874_v56 = vadd.f32 %v2096_v12, %v873_v54 }
 0x509   :  { %v917_v57 = vadd.f32 %v874_v56, %v2145_v6 }
 0x50b   :  { %v933_v59 = vmax.f32 %v917_v57, 0.0 }
 0x50c   :  { %v964_v60 = vld [vmem:[#allocation4 + $0x38] sm:$0xff] }
 0x50d   :  { %949 = vst.msk [vmem:[#allocation4 + $0x40] sm:$0xff] %vm308_vm2, %v933_v59  ;;  %1680 = vmatmul.msk.f32.gmra.mxu1 %vm308_vm2, %v964_v60 }
 0x50e   :  { %v875_v61 = vpop.f32.mrf.mxu0 }
 0x50f   :  { %v876_v4 = vadd.f32 %v2096_v12, %v875_v61 }
 0x511   :  { %v918_v5 = vadd.f32 %v876_v4, %v2151_v15 }
 0x513   :  { %v934_v8 = vmax.f32 %v918_v5, 0.0 }
 0x514   :  { %v965_v2 = vld [vmem:[#allocation4 + $0x40] sm:$0xff] }
 0x515   :  { %950 = vst.msk [vmem:[#allocation4 + $0x48] sm:$0xff] %vm308_vm2, %v934_v8  ;;  %1681 = vmatmul.msk.f32.gmra.mxu1 %vm308_vm2, %v965_v2 }
 0x516   :  { %v878_v9 = vpop.f32.mrf.mxu0 }
 0x517   :  { %v879_v10 = vadd.f32 %v2096_v12, %v878_v9 }
 0x519   :  { %v919_v13 = vadd.f32 %v879_v10, %v2157_v21 }
 0x51b   :  { %v935_v16 = vmax.f32 %v919_v13, 0.0 }
 0x51c   :  { %v966_v17 = vld [vmem:[#allocation4 + $0x48] sm:$0xff] }
 0x51d   :  { %951 = vst.msk [vmem:[#allocation4 + $0x50] sm:$0xff] %vm308_vm2, %v935_v16  ;;  %1682 = vmatmul.msk.f32.gmra.mxu1 %vm308_vm2, %v966_v17 }
 0x51e   :  { %v880_v3 = vpop.f32.mrf.mxu0 }
 0x51f   :  { %v881_v19 = vadd.f32 %v2096_v12, %v880_v3 }
 0x521   :  { %v920_v20 = vadd.f32 %v881_v19, %v2163_v30 }
 0x523   :  { %v936_v22 = vmax.f32 %v920_v20, 0.0 }
 0x524   :  { %v967_v23 = vld [vmem:[#allocation4 + $0x50] sm:$0xff] }
 0x525   :  { %952 = vst.msk [vmem:[#allocation4 + $0x58] sm:$0xff] %vm308_vm2, %v936_v22  ;;  %1683 = vmatmul.msk.f32.gmra.mxu1 %vm308_vm2, %v967_v23 }
 0x526   :  { %v883_v25 = vpop.f32.mrf.mxu0 }
 0x527   :  { %v884_v27 = vadd.f32 %v2096_v12, %v883_v25 }
 0x529   :  { %v921_v29 = vadd.f32 %v884_v27, %v2169_v37 }
 0x52b   :  { %v937_v31 = vmax.f32 %v921_v29, 0.0 }
 0x52c   :  { %v968_v33 = vld [vmem:[#allocation4 + $0x58] sm:$0xff] }
 0x52d   :  { %953 = vst.msk [vmem:[#allocation4 + $0x60] sm:$0xff] %vm308_vm2, %v937_v31  ;;  %1684 = vmatmul.msk.f32.gmra.mxu1 %vm308_vm2, %v968_v33 }
 0x52e   :  { %v885_v34 = vpop.f32.mrf.mxu0 }
 0x52f   :  { %v886_v35 = vadd.f32 %v2096_v12, %v885_v34 }
 0x531   :  { %v922_v36 = vadd.f32 %v886_v35, %v2175_v47 }
 0x533   :  { %v938_v40 = vmax.f32 %v922_v36, 0.0 }
 0x534   :  { %v969_v41 = vld [vmem:[#allocation4 + $0x60] sm:$0xff] }
 0x535   :  { %954 = vst.msk [vmem:[#allocation4 + $0x68] sm:$0xff] %vm308_vm2, %v938_v40  ;;  %1685 = vmatmul.msk.f32.gmra.mxu1 %vm308_vm2, %v969_v41  ;;  %v1270_v40 = vld [vmem:[%s2410_s7 + $0x18] sm:$0xff] }
 0x536   :  { %v888_v42 = vpop.f32.mrf.mxu0  ;;  %1335 = vmatpush.msrb.mxu2 %v1270_v40 }
 0x537   :  { %v889_v43 = vadd.f32 %v2096_v12, %v888_v42 }
 0x539   :  { %v923_v45 = vadd.f32 %v889_v43, %v2181_v55 }
 0x53b   :  { %v939_v48 = vmax.f32 %v923_v45, 0.0 }
 0x53c   :  { %v970_v50 = vld [vmem:[#allocation4 + $0x68] sm:$0xff] }
 0x53d   :  { %955 = vst.msk [vmem:[#allocation4 + $0x70] sm:$0xff] %vm308_vm2, %v939_v48  ;;  %1686 = vmatmul.msk.f32.gmra.mxu1 %vm308_vm2, %v970_v50 }
 0x53e   :  { %v890_v0 = vpop.f32.mrf.mxu0 }
 0x53f   :  { %v891_v51 = vadd.f32 %v2096_v12, %v890_v0 }
 0x541   :  { %v924_v54 = vadd.f32 %v891_v51, %v2187_v63 }
 0x543   :  { %v940_v56 = vmax.f32 %v924_v54, 0.0 }
 0x544   :  { %v971_v57 = vld [vmem:[#allocation4 + $0x70] sm:$0xff] }
 0x545   :  { %956 = vst.msk [vmem:[#allocation4 + $0x78] sm:$0xff] %vm308_vm2, %v940_v56  ;;  %1687 = vmatmul.msk.f32.gmra.mxu1 %vm308_vm2, %v971_v57 }
 0x54c   :  { %v972_v59 = vld [vmem:[#allocation4 + $0x78] sm:$0xff] }
 0x54d   :  { %1688 = vmatmul.msk.f32.gmra.mxu1 %vm308_vm2, %v972_v59 }
 0x552   :  { %v1038_v60 = vpop.f32.mrf.mxu1 }
 0x55a   :  { %v1041_v61 = vpop.f32.mrf.mxu1 }
 0x55b   :  { %v1086_v4 = vpack.c.bf16 %v1041_v61, %v1038_v60 }
 0x562   :  { %v1044_v5 = vpop.f32.mrf.mxu1 }
 0x56a   :  { %v1047_v8 = vpop.f32.mrf.mxu1 }
 0x56b   :  { %v1087_v2 = vpack.c.bf16 %v1047_v8, %v1044_v5 }
 0x572   :  { %v1050_v9 = vpop.f32.mrf.mxu1 }
 0x57a   :  { %v1053_v10 = vpop.f32.mrf.mxu1 }
 0x57b   :  { %v1088_v13 = vpack.c.bf16 %v1053_v10, %v1050_v9 }
 0x582   :  { %v1056_v16 = vpop.f32.mrf.mxu1 }
 0x58a   :  { %v1059_v17 = vpop.f32.mrf.mxu1 }
 0x58b   :  { %v1089_v3 = vpack.c.bf16 %v1059_v17, %v1056_v16 }
 0x592   :  { %v1062_v19 = vpop.f32.mrf.mxu1 }
 0x59a   :  { %v1065_v20 = vpop.f32.mrf.mxu1 }
 0x59b   :  { %v1090_v36 = vpack.c.bf16 %v1065_v20, %v1062_v19 }
 0x5a2   :  { %v1068_v22 = vpop.f32.mrf.mxu1 }
 0x5aa   :  { %v1071_v23 = vpop.f32.mrf.mxu1 }
 0x5ab   :  { %v1091_v35 = vpack.c.bf16 %v1071_v23, %v1068_v22 }
 0x5b2   :  { %v1074_v25 = vpop.f32.mrf.mxu1 }
 0x5ba   :  { %v1077_v27 = vpop.f32.mrf.mxu1 }
 0x5bb   :  { %v1092_v34 = vpack.c.bf16 %v1077_v27, %v1074_v25 }
 0x5c2   :  { %v1080_v29 = vpop.f32.mrf.mxu1 }
 0x5ca   :  { %v1083_v31 = vpop.f32.mrf.mxu1 }
 0x5cb   :  { %v1093_v33 = vpack.c.bf16 %v1083_v31, %v1080_v29 }
 0x5cd   :  { %1138 = vmatpush.bf16.msrb.mxu3 %v1093_v33 }
 0x5d1   :  { %1139 = vmatpush.bf16.msrb.mxu3 %v1092_v34 }
 0x5d5   :  { %1140 = vmatpush.bf16.msrb.mxu3 %v1091_v35 }
 0x5d9   :  { %1141 = vmatpush.bf16.msrb.mxu3 %v1090_v36 }
 0x5dd   :  { %1142 = vmatpush.bf16.msrb.mxu3 %v1089_v3 }
 0x5e1   :  { %1143 = vmatpush.bf16.msrb.mxu3 %v1088_v13 }
 0x5e5   :  { %1144 = vmatpush.bf16.msrb.mxu3 %v1087_v2 }
 0x5e9   :  { %1145 = vmatpush.bf16.msrb.mxu3 %v1086_v4 }
 0x5ec   :  { %1146 = vmatmul.bf16.vlgmr.msrb.gmra.mxu3 %v2055_v39  ;;  %v1269_v39 = vld [vmem:[%s2410_s7 + $0x10] sm:$0xff] }
 0x5ed   :  { %1336 = vmatpush.msrb.mxu2 %v1269_v39 }
 0x5fc   :  { %1151 = vmatmul.bf16.gmra.mxu3 %v2060_v44  ;;  %v1268_v44 = vld [vmem:[%s2410_s7 + $0x8] sm:$0xff] }
 0x5fd   :  { %1337 = vmatpush.msrb.mxu2 %v1268_v44 }
 0x60c   :  { %1156 = vmatmul.bf16.gmra.mxu3 %v2065_v49  ;;  %v1267_v49 = vld [vmem:[%s2410_s7] sm:$0xff] }
 0x60d   :  { %1338 = vmatpush.msrb.mxu2 %v1267_v49 }
 0x61c   :  { %1161 = vmatmul.bf16.gmra.mxu3 %v2070_v53 }
 0x62c   :  { %1166 = vmatmul.bf16.gmra.mxu3 %v2075_v58 }
 0x63c   :  { %1171 = vmatmul.bf16.gmra.mxu3 %v2080_v62 }
 0x64c   :  { %1176 = vmatmul.bf16.gmra.mxu3 %v2085_v7 }
 0x65c   :  { %1181 = vmatmul.bf16.gmra.mxu3 %v2090_v11 }
 0x66f   :  { %v1147_v53 = vpop.f32.mrf.mxu3 }
 0x670   :  { %v1148_v58 = vadd.f32 %v2096_v12, %v1147_v53 }
 0x672   :  { %v1203_v62 = vadd.f32 %v1148_v58, %v2098_v14 }
 0x674   :  { %v1219_v7 = vmax.f32 %v1203_v62, 0.0 }
 0x676   :  { %1235 = vst.msk [vmem:[#allocation4] sm:$0xff] %vm308_vm2, %v1219_v7 }
 0x677   :  { %v1149_v41 = vpop.f32.mrf.mxu3 }
 0x678   :  { %v1150_v42 = vadd.f32 %v2096_v12, %v1149_v41 }
 0x67a   :  { %v1204_v43 = vadd.f32 %v1150_v42, %v2103_v18 }
 0x67c   :  { %v1220_v45 = vmax.f32 %v1204_v43, 0.0 }
 0x67d   :  { %v1251_v11 = vld [vmem:[#allocation4] sm:$0xff] }
 0x67e   :  { %1236 = vst.msk [vmem:[#allocation4 + $0x8] sm:$0xff] %vm308_vm2, %v1220_v45  ;;  %1689 = vmatmul.msk.f32.vlgmr.msrb.gmra.mxu2 %vm308_vm2, %v1251_v11 }
 0x67f   :  { %v1152_v48 = vpop.f32.mrf.mxu3 }
 0x680   :  { %v1153_v50 = vadd.f32 %v2096_v12, %v1152_v48 }
 0x682   :  { %v1205_v0 = vadd.f32 %v1153_v50, %v2109_v24 }
 0x684   :  { %v1221_v14 = vmax.f32 %v1205_v0, 0.0 }
 0x685   :  { %v1252_v51 = vld [vmem:[#allocation4 + $0x8] sm:$0xff] }
 0x686   :  { %1237 = vst.msk [vmem:[#allocation4 + $0x10] sm:$0xff] %vm308_vm2, %v1221_v14  ;;  %1690 = vmatmul.msk.f32.gmra.mxu2 %vm308_vm2, %v1252_v51 }
 0x687   :  { %v1154_v54 = vpop.f32.mrf.mxu3 }
 0x688   :  { %v1155_v18 = vadd.f32 %v2096_v12, %v1154_v54 }
 0x68a   :  { %v1206_v56 = vadd.f32 %v1155_v18, %v2115_v32 }
 0x68c   :  { %v1222_v57 = vmax.f32 %v1206_v56, 0.0 }
 0x68d   :  { %v1253_v59 = vld [vmem:[#allocation4 + $0x10] sm:$0xff] }
 0x68e   :  { %1238 = vst.msk [vmem:[#allocation4 + $0x18] sm:$0xff] %vm308_vm2, %v1222_v57  ;;  %1691 = vmatmul.msk.f32.gmra.mxu2 %vm308_vm2, %v1253_v59 }
 0x68f   :  { %v1157_v60 = vpop.f32.mrf.mxu3 }
 0x690   :  { %v1158_v24 = vadd.f32 %v2096_v12, %v1157_v60 }
 0x692   :  { %v1207_v61 = vadd.f32 %v1158_v24, %v2121_v38 }
 0x694   :  { %v1223_v4 = vmax.f32 %v1207_v61, 0.0 }
 0x695   :  { %v1254_v5 = vld [vmem:[#allocation4 + $0x18] sm:$0xff] }
 0x696   :  { %1239 = vst.msk [vmem:[#allocation4 + $0x20] sm:$0xff] %vm308_vm2, %v1223_v4  ;;  %1692 = vmatmul.msk.f32.gmra.mxu2 %vm308_vm2, %v1254_v5 }
 0x697   :  { %v1159_v8 = vpop.f32.mrf.mxu3 }
 0x698   :  { %v1160_v32 = vadd.f32 %v2096_v12, %v1159_v8 }
 0x69a   :  { %v1208_v2 = vadd.f32 %v1160_v32, %v2127_v46 }
 0x69c   :  { %v1224_v9 = vmax.f32 %v1208_v2, 0.0 }
 0x69d   :  { %v1255_v10 = vld [vmem:[#allocation4 + $0x20] sm:$0xff] }
 0x69e   :  { %1240 = vst.msk [vmem:[#allocation4 + $0x28] sm:$0xff] %vm308_vm2, %v1224_v9  ;;  %1693 = vmatmul.msk.f32.gmra.mxu2 %vm308_vm2, %v1255_v10 }
 0x69f   :  { %v1162_v13 = vpop.f32.mrf.mxu3 }
 0x6a0   :  { %v1163_v38 = vadd.f32 %v2096_v12, %v1162_v13 }
 0x6a2   :  { %v1209_v16 = vadd.f32 %v1163_v38, %v2133_v52 }
 0x6a4   :  { %v1225_v17 = vmax.f32 %v1209_v16, 0.0 }
 0x6a5   :  { %v1256_v3 = vld [vmem:[#allocation4 + $0x28] sm:$0xff] }
 0x6a6   :  { %1241 = vst.msk [vmem:[#allocation4 + $0x30] sm:$0xff] %vm308_vm2, %v1225_v17  ;;  %1694 = vmatmul.msk.f32.gmra.mxu2 %vm308_vm2, %v1256_v3  ;;  %v1722_v3 = vld [vmem:[%s2411_s8] ss:$0 sm:$0xff] }
 0x6a7   :  { %v1164_v19 = vpop.f32.mrf.mxu3 }
 0x6a8   :  { %v1165_v46 = vadd.f32 %v2096_v12, %v1164_v19 }
 0x6aa   :  { %v1210_v20 = vadd.f32 %v1165_v46, %v2139_v1 }
 0x6ac   :  { %v1226_v22 = vmax.f32 %v1210_v20, 0.0 }
 0x6ad   :  { %v1257_v23 = vld [vmem:[#allocation4 + $0x30] sm:$0xff] }
 0x6ae   :  { %1242 = vst.msk [vmem:[#allocation4 + $0x38] sm:$0xff] %vm308_vm2, %v1226_v22  ;;  %1695 = vmatmul.msk.f32.gmra.mxu2 %vm308_vm2, %v1257_v23 }
 0x6af   :  { %v1167_v25 = vpop.f32.mrf.mxu3 }
 0x6b0   :  { %v1168_v52 = vadd.f32 %v2096_v12, %v1167_v25  ;;  %v1429_v25 = vld [vmem:[%s2412_s9 + $0x18] sm:$0xff] }
 0x6b1   :  { %1449 = vmatpush.msra.mxu1 %v1429_v25 }
 0x6b2   :  { %v1211_v27 = vadd.f32 %v1168_v52, %v2145_v6  ;;  %v1428_v52 = vld [vmem:[%s2412_s9 + $0x10] sm:$0xff] }
 0x6b3   :  { %1450 = vmatpush.msra.mxu1 %v1428_v52 }
 0x6b4   :  { %v1227_v29 = vmax.f32 %v1211_v27, 0.0 }
 0x6b5   :  { %v1258_v31 = vld [vmem:[#allocation4 + $0x38] sm:$0xff] }
 0x6b6   :  { %1243 = vst.msk [vmem:[#allocation4 + $0x40] sm:$0xff] %vm308_vm2, %v1227_v29  ;;  %1696 = vmatmul.msk.f32.gmra.mxu2 %vm308_vm2, %v1258_v31 }
 0x6b7   :  { %v1169_v33 = vpop.f32.mrf.mxu3 }
 0x6b8   :  { %v1170_v1 = vadd.f32 %v2096_v12, %v1169_v33 }
 0x6ba   :  { %v1212_v34 = vadd.f32 %v1170_v1, %v2151_v15 }
 0x6bc   :  { %v1228_v35 = vmax.f32 %v1212_v34, 0.0 }
 0x6bd   :  { %v1259_v36 = vld [vmem:[#allocation4 + $0x40] sm:$0xff] }
 0x6be   :  { %1244 = vst.msk [vmem:[#allocation4 + $0x48] sm:$0xff] %vm308_vm2, %v1228_v35  ;;  %1697 = vmatmul.msk.f32.gmra.mxu2 %vm308_vm2, %v1259_v36 }
 0x6bf   :  { %v1172_v40 = vpop.f32.mrf.mxu3 }
 0x6c0   :  { %v1173_v6 = vadd.f32 %v2096_v12, %v1172_v40 }
 0x6c2   :  { %v1213_v39 = vadd.f32 %v1173_v6, %v2157_v21 }
 0x6c4   :  { %v1229_v44 = vmax.f32 %v1213_v39, 0.0 }
 0x6c5   :  { %v1260_v49 = vld [vmem:[#allocation4 + $0x48] sm:$0xff] }
 0x6c6   :  { %1245 = vst.msk [vmem:[#allocation4 + $0x50] sm:$0xff] %vm308_vm2, %v1229_v44  ;;  %1698 = vmatmul.msk.f32.gmra.mxu2 %vm308_vm2, %v1260_v49 }
 0x6c7   :  { %v1174_v53 = vpop.f32.mrf.mxu3 }
 0x6c8   :  { %v1175_v15 = vadd.f32 %v2096_v12, %v1174_v53 }
 0x6ca   :  { %v1214_v58 = vadd.f32 %v1175_v15, %v2163_v30 }
 0x6cc   :  { %v1230_v62 = vmax.f32 %v1214_v58, 0.0 }
 0x6cd   :  { %v1261_v7 = vld [vmem:[#allocation4 + $0x50] sm:$0xff] }
 0x6ce   :  { %1246 = vst.msk [vmem:[#allocation4 + $0x58] sm:$0xff] %vm308_vm2, %v1230_v62  ;;  %1699 = vmatmul.msk.f32.gmra.mxu2 %vm308_vm2, %v1261_v7 }
 0x6cf   :  { %v1177_v41 = vpop.f32.mrf.mxu3 }
 0x6d0   :  { %v1178_v21 = vadd.f32 %v2096_v12, %v1177_v41 }
 0x6d2   :  { %v1215_v42 = vadd.f32 %v1178_v21, %v2169_v37 }
 0x6d4   :  { %v1231_v43 = vmax.f32 %v1215_v42, 0.0 }
 0x6d5   :  { %v1262_v45 = vld [vmem:[#allocation4 + $0x58] sm:$0xff] }
 0x6d6   :  { %1247 = vst.msk [vmem:[#allocation4 + $0x60] sm:$0xff] %vm308_vm2, %v1231_v43  ;;  %1700 = vmatmul.msk.f32.gmra.mxu2 %vm308_vm2, %v1262_v45 }
 0x6d7   :  { %v1179_v11 = vpop.f32.mrf.mxu3 }
 0x6d8   :  { %v1180_v30 = vadd.f32 %v2096_v12, %v1179_v11 }
 0x6da   :  { %v1216_v48 = vadd.f32 %v1180_v30, %v2175_v47 }
 0x6dc   :  { %v1232_v50 = vmax.f32 %v1216_v48, 0.0 }
 0x6dd   :  { %v1263_v0 = vld [vmem:[#allocation4 + $0x60] sm:$0xff] }
 0x6de   :  { %1248 = vst.msk [vmem:[#allocation4 + $0x68] sm:$0xff] %vm308_vm2, %v1232_v50  ;;  %1701 = vmatmul.msk.f32.gmra.mxu2 %vm308_vm2, %v1263_v0 }
 0x6df   :  { %v1182_v14 = vpop.f32.mrf.mxu3 }
 0x6e0   :  { %v1183_v37 = vadd.f32 %v2096_v12, %v1182_v14  ;;  %v1404_v14 = vld [vmem:[%s2404_s1] sm:$0xff] }
 0x6e2   :  { %v1217_v51 = vadd.f32 %v1183_v37, %v2181_v55  ;;  %v1427_v37 = vld [vmem:[%s2412_s9 + $0x8] sm:$0xff] }
 0x6e3   :  { %1451 = vmatpush.msra.mxu1 %v1427_v37 }
 0x6e4   :  { %v1233_v54 = vmax.f32 %v1217_v51, 0.0  ;;  %v1426_v51 = vld [vmem:[%s2412_s9] sm:$0xff] }
 0x6e5   :  { %v1264_v18 = vld [vmem:[#allocation4 + $0x68] sm:$0xff]  ;;  %1452 = vmatpush.msra.mxu1 %v1426_v51 }
 0x6e6   :  { %1249 = vst.msk [vmem:[#allocation4 + $0x70] sm:$0xff] %vm308_vm2, %v1233_v54  ;;  %1702 = vmatmul.msk.f32.gmra.mxu2 %vm308_vm2, %v1264_v18  ;;  %v1461_v54 = vld [vmem:[%s2414_s11 + $0x18] sm:$0xff] }
 0x6e7   :  { %v1184_v56 = vpop.f32.mrf.mxu3  ;;  %1481 = vmatpush.msra.mxu3 %v1461_v54 }
 0x6e8   :  { %v1185_v47 = vadd.f32 %v2096_v12, %v1184_v56 }
 0x6ea   :  { %v1218_v57 = vadd.f32 %v1185_v47, %v2187_v63  ;;  %v1460_v47 = vld [vmem:[%s2414_s11 + $0x10] sm:$0xff] }
 0x6eb   :  { %1482 = vmatpush.msra.mxu3 %v1460_v47 }
 0x6ec   :  { %v1234_v59 = vmax.f32 %v1218_v57, 0.0  ;;  %v1459_v57 = vld [vmem:[%s2414_s11 + $0x8] sm:$0xff] }
 0x6ed   :  { %v1265_v60 = vld [vmem:[#allocation4 + $0x70] sm:$0xff]  ;;  %1483 = vmatpush.msra.mxu3 %v1459_v57 }
 0x6ee   :  { %1250 = vst.msk [vmem:[#allocation4 + $0x78] sm:$0xff] %vm308_vm2, %v1234_v59  ;;  %1703 = vmatmul.msk.f32.gmra.mxu2 %vm308_vm2, %v1265_v60  ;;  %v1458_v59 = vld [vmem:[%s2414_s11] sm:$0xff] }
 0x6ef   :  { %1484 = vmatpush.msra.mxu3 %v1458_v59  ;;  %v1723_v60 = vld [vmem:[%s2413_s10] ss:$0 sm:$0xff] }
 0x6f5   :  { %v1266_v24 = vld [vmem:[#allocation4 + $0x78] sm:$0xff] }
 0x6f6   :  { %1704 = vmatmul.msk.f32.gmra.mxu2 %vm308_vm2, %v1266_v24 }
 0x701   :  { %v1340_v55 = vpop.f32.mrf.mxu2 }
 0x702   :  { %v1341_v30 = vadd.f32 %v1722_v3, %v1340_v55 }
 0x704   :  { %v1388_v0 = vmax.f32 %v1341_v30, 0.0 }
 0x709   :  { %v1343_v61 = vpop.f32.mrf.mxu2 }
 0x70a   :  { %v1344_v45 = vadd.f32 %v1722_v3, %v1343_v61 }
 0x70c   :  { %v1389_v50 = vmax.f32 %v1344_v45, 0.0 }
 0x711   :  { %v1346_v4 = vpop.f32.mrf.mxu2 }
 0x712   :  { %v1347_v42 = vadd.f32 %v1722_v3, %v1346_v4  ;;  %v1724_v4 = vld [vmem:[%s2415_s12] ss:$0 sm:$0xff] }
 0x714   :  { %v1390_v48 = vmax.f32 %v1347_v42, 0.0 }
 0x719   :  { %v1349_v5 = vpop.f32.mrf.mxu2 }
 0x71a   :  { %v1350_v41 = vadd.f32 %v1722_v3, %v1349_v5 }
 0x71c   :  { %v1391_v11 = vmax.f32 %v1350_v41, 0.0 }
 0x721   :  { %v1352_v8 = vpop.f32.mrf.mxu2 }
 0x722   :  { %v1353_v62 = vadd.f32 %v1722_v3, %v1352_v8 }
 0x724   :  { %v1392_v43 = vmax.f32 %v1353_v62, 0.0 }
 0x729   :  { %v1355_v32 = vpop.f32.mrf.mxu2 }
 0x72a   :  { %v1356_v15 = vadd.f32 %v1722_v3, %v1355_v32 }
 0x72c   :  { %v1393_v21 = vmax.f32 %v1356_v15, 0.0 }
 0x731   :  { %v1358_v2 = vpop.f32.mrf.mxu2 }
 0x732   :  { %v1359_v49 = vadd.f32 %v1722_v3, %v1358_v2 }
 0x734   :  { %v1394_v7 = vmax.f32 %v1359_v49, 0.0 }
 0x739   :  { %v1361_v9 = vpop.f32.mrf.mxu2 }
 0x73a   :  { %v1362_v39 = vadd.f32 %v1722_v3, %v1361_v9 }
 0x73c   :  { %v1395_v58 = vmax.f32 %v1362_v39, 0.0 }
 0x741   :  { %v1364_v12 = vpop.f32.mrf.mxu2 }
 0x742   :  { %v1365_v40 = vadd.f32 %v1722_v3, %v1364_v12 }
 0x744   :  { %v1396_v53 = vmax.f32 %v1365_v40, 0.0 }
 0x749   :  { %v1367_v10 = vpop.f32.mrf.mxu2 }
 0x74a   :  { %v1368_v35 = vadd.f32 %v1722_v3, %v1367_v10  ;;  %v1489_v10 = vld [vmem:[%s2405_s2] sm:$0xff] }
 0x74b   :  { %vm1530_vm1 = vcmp.gt.f32.partialorder %v1489_v10, 0.5 }
 0x74c   :  { %v1397_v44 = vmax.f32 %v1368_v35, 0.0 }
 0x751   :  { %v1370_v63 = vpop.f32.mrf.mxu2 }
 0x752   :  { %v1371_v1 = vadd.f32 %v1722_v3, %v1370_v63  ;;  %v1531_v63 = vsel %vm1530_vm1, %v1922_v26, 129 }
 0x754   :  { %v1398_v6 = vmax.f32 %v1371_v1, 0.0 }
 0x759   :  { %v1373_v13 = vpop.f32.mrf.mxu2 }
 0x75a   :  { %v1374_v31 = vadd.f32 %v1722_v3, %v1373_v13  ;;  %v1533_v13 = vshra.s32 %v1531_v63, 16 }
 0x75c   :  { %v1399_v36 = vmax.f32 %v1374_v31, 0.0 }
 0x761   :  { %v1376_v38 = vpop.f32.mrf.mxu2 }
 0x762   :  { %v1377_v27 = vadd.f32 %v1722_v3, %v1376_v38  ;;  %v1535_v38 = vcvt.s32.f32 %v1533_v13 }
 0x764   :  { %v1400_v34 = vmax.f32 %v1377_v27, 0.0  ;;  %1536 = vmin.xlane.f32.xlu2 %v1535_v38 }
 0x769   :  { %v1379_v16 = vpop.f32.mrf.mxu2 }
 0x76a   :  { %v1380_v22 = vadd.f32 %v1722_v3, %v1379_v16 }
 0x76c   :  { %v1401_v33 = vmax.f32 %v1380_v22, 0.0 }
 0x771   :  { %v1382_v17 = vpop.f32.mrf.mxu2 }
 0x772   :  { %v1383_v46 = vadd.f32 %v1722_v3, %v1382_v17 }
 0x774   :  { %v1402_v29 = vmax.f32 %v1383_v46, 0.0  ;;  %v1532_v46 = vand.u32 65535, %v1531_v63 }
 0x776   :  { %v1534_v22 = vcvt.s32.f32 %v1532_v46 }
 0x779   :  { %v1385_v19 = vpop.f32.mrf.mxu2 }
 0x77a   :  { %v1386_v20 = vadd.f32 %v1722_v3, %v1385_v19 }
 0x77c   :  { %v1403_v23 = vmax.f32 %v1386_v20, 0.0 }
 0x77e   :  { %1405 = vmatpush.msra.mxu0 %v1403_v23 }
 0x780   :  { %1406 = vmatpush.msra.mxu0 %v1402_v29 }
 0x782   :  { %1407 = vmatpush.msra.mxu0 %v1401_v33 }
 0x784   :  { %1408 = vmatpush.msra.mxu0 %v1400_v34 }
 0x786   :  { %1409 = vmatpush.msra.mxu0 %v1399_v36 }
 0x788   :  { %1410 = vmatpush.msra.mxu0 %v1398_v6 }
 0x78a   :  { %1411 = vmatpush.msra.mxu0 %v1397_v44 }
 0x78c   :  { %1412 = vmatpush.msra.mxu0 %v1396_v53 }
 0x78e   :  { %1413 = vmatpush.msra.mxu0 %v1395_v58 }
 0x790   :  { %1414 = vmatpush.msra.mxu0 %v1394_v7 }
 0x792   :  { %1415 = vmatpush.msra.mxu0 %v1393_v21 }
 0x794   :  { %1416 = vmatpush.msra.mxu0 %v1392_v43 }
 0x796   :  { %1417 = vmatpush.msra.mxu0 %v1391_v11 }
 0x798   :  { %1418 = vmatpush.msra.mxu0 %v1390_v48 }
 0x79a   :  { %1419 = vmatpush.msra.mxu0 %v1389_v50 }
 0x79c   :  { %1420 = vmatpush.msra.mxu0 %v1388_v0 }
 0x79d   :  { %1421 = vmatmul.f32.vlgmr.msra.gmra.mxu0 %v1404_v14 }
 0x7d7   :  { %v1537_v20 = vpop.xlane.xlu2 %1536 }
 0x7d8   :  { %vm1538_vm3 = vcmp.eq.f32.partialorder %v1535_v38, %v1537_v20 }
 0x7d9   :  { %v1539_v23 = vsel %vm1538_vm3, %v1534_v22, inf }
 0x81a   :  { %v1422_v18 = vpop.f32.mrf.mxu0 }
 0x81b   :  { %v1425_v56 = vmax.f32 %v1422_v18, 0.0 }
 0x81d   :  { %1705 = vmatmul.msk.f32.vlgmr.msra.gmra.mxu1 %vm308_vm2, %v1425_v56 }
 0x89a   :  { %v1454_v24 = vpop.f32.mrf.mxu1 }
 0x89b   :  { %v1455_v55 = vadd.f32 %v1723_v60, %v1454_v24 }
 0x89d   :  { %v1457_v61 = vmax.f32 %v1455_v55, 0.0 }
 0x89f   :  { %1706 = vmatmul.msk.f32.vlgmr.msra.gmra.mxu3 %vm308_vm2, %v1457_v61 }
 0x922   :  { %v1486_v5 = vpop.f32.mrf.mxu3 }
 0x923   :  { %v1487_v8 = vadd.f32 %v1724_v4, %v1486_v5 }
 0x925   :  { %1490 = vmax.xlane.f32.xlu0 %v1487_v8 }
 0x998   :  { %v1491_v32 = vpop.xlane.xlu0 %1490 }
 0x999   :  { %v1492_v2 = vsub.f32 %v1487_v8, %v1491_v32 }
 0x99b   :  { %v1493_v9 = vmul.f32 1.442695, %v1492_v2 }
 0x99d   :  { %1725 = vpow2.f32 %v1493_v9 }
 0x9a3   :  { %v1726_v12 = vpop.eup %1725 }
 0x9a4   :  { %1495 = vadd.xlane.f32.xlu0 %v1726_v12 }
 0x9ac   :  { %1540 = vmin.xlane.f32.xlu0 %v1539_v23 }
 0xa17   :  { %v1496_v16 = vpop.xlane.xlu0 %1495 }
 0xa18   :  { %1727 = vlog2.f32 %v1496_v16 }
 0xa1e   :  { %v1728_v17 = vpop.eup %1727 }
 0xa1f   :  { %v1498_v3 = vmul.f32 0.6931472, %v1728_v17  ;;  %v1541_v15 = vpop.xlane.xlu0 %1540 }
 0xa20   :  { %v1542_v7 = vcvt.f32.s32 %v1541_v15 }
 0xa21   :  { %v1499_v19 = vsub.f32 %v1492_v2, %v1498_v3 }
 0xa23   :  { %1561 = vst [vmem:[%s2417_s14] sm:$0xff] %v1499_v19  ;;  %1512 = vmax.xlane.f32.xlu1 %v1499_v19  ;;  %v1500_v31 = vmul.f32 %v1499_v19, %v1489_v10 }
 0xa96   :  { %v1513_v25 = vpop.xlane.xlu1 %1512 }
 0xa97   :  { %vm1514_vm4 = vcmp.ge.f32.partialorder %v1499_v19, %v1513_v25 }
 0xa98   :  { %v1515_v52 = vsel %vm1514_vm4, %v1922_v26, 129  ;;  %v1543_v26 = vcvt.f32.s32 %v1537_v20 }
 0xa99   :  { %v1517_v27 = vshra.s32 %v1515_v52, 16  ;;  %v1516_v33 = vand.u32 65535, %v1515_v52 }
 0xa9a   :  { %v1544_v62 = vshll.u32 %v1543_v26, 16 }
 0xa9b   :  { %v1519_v29 = vcvt.s32.f32 %v1517_v27  ;;  %v1518_v1 = vcvt.s32.f32 %v1516_v33 }
 0xa9c   :  { %v1545_v43 = vadd.s32 %v1544_v62, %v1542_v7 }
 0xa9d   :  { %1520 = vmin.xlane.f32.xlu1 %v1519_v29 }
 0xaa5   :  { %1501 = vadd.xlane.f32.xlu1 %v1500_v31 }
 0xb10   :  { %v1521_v34 = vpop.xlane.xlu1 %1520 }
 0xb11   :  { %vm1522_vm5 = vcmp.eq.f32.partialorder %v1519_v29, %v1521_v34  ;;  %v1527_v58 = vcvt.f32.s32 %v1521_v34 }
 0xb12   :  { %v1523_v35 = vsel %vm1522_vm5, %v1518_v1, inf }
 0xb13   :  { %1524 = vmin.xlane.f32.xlu2 %v1523_v35  ;;  %v1528_v21 = vshll.u32 %v1527_v58, 16 }
 0xb18   :  { %v1502_v36 = vpop.xlane.xlu1 %1501 }
 0xb19   :  { %v1503_v40 = vrot.slane %v1502_v36, 4 }
 0xb1b   :  { %v1504_v6 = vadd.f32 %v1503_v40, %v1502_v36 }
 0xb1d   :  { %v1505_v39 = vrot.slane %v1504_v6, 2 }
 0xb1f   :  { %v1506_v44 = vadd.f32 %v1505_v39, %v1504_v6 }
 0xb21   :  { %v1507_v49 = vrot.slane %v1506_v44, 1 }
 0xb23   :  { %v1508_v53 = vadd.f32 %v1507_v49, %v1506_v44 }
 0xb25   :  { %1709 = vpush %v1508_v53 }
 0xb56   :  { %s1710_s2 = spop %1709 }
 0xb57   :  { %s1510_s14 = ssub.f32 0.0, %s1710_s2 }
 0xb59   :  { %s1511_s3 = smul.f32 0.25, %s1510_s14 }
 0xb5b   :  { %1563 = sst [smem:[#allocation6]] %s1511_s3 }
 0xb5c   :  { %1576 = dma.smem_to_hbm %s1761_s21, 16, %s1574_s13, [#allocation7]  }
 0xb86   :  { %v1525_v41 = vpop.xlane.xlu2 %1524 }
 0xb87   :  { %v1526_v42 = vcvt.f32.s32 %v1525_v41 }
 0xb89   :  { %v1529_v45 = vadd.s32 %v1528_v21, %v1526_v42 }
 0xb8b   :  { %vm1546_vm7 = vcmp.eq.s32.totalorder %v1529_v45, %v1545_v43 }
 0xb8c   :  { %v1707_v11 = vsel %vm1546_vm7, 1.0, %v1760_v28 }
 0xb8d   :  { %v1550_v30 = vsel %vm1549_vm6, %v1707_v11, 0.0 }
 0xb8e   :  { %1551 = vadd.xlane.f32.xlu2 %v1550_v30 }
 0xc01   :  { %v1552_v48 = vpop.xlane.xlu2 %1551 }
 0xc02   :  { %v1553_v50 = vrot.slane %v1552_v48, 4 }
 0xc04   :  { %v1554_v0 = vadd.f32 %v1553_v50, %v1552_v48 }
 0xc06   :  { %v1555_v14 = vrot.slane %v1554_v0, 2 }
 0xc08   :  { %v1556_v37 = vadd.f32 %v1555_v14, %v1554_v0 }
 0xc0a   :  { %v1557_v51 = vrot.slane %v1556_v37, 1 }
 0xc0c   :  { %v1558_v54 = vadd.f32 %v1557_v51, %v1556_v37 }
 0xc0e   :  { %1711 = vpush %v1558_v54 }
 0xc3f   :  { %s1712_s24 = spop %1711 }
 0xc40   :  { %s1560_s25 = smul.f32 0.25, %s1712_s24 }
 0xc42   :  { %1565 = sst [smem:[#allocation8]] %s1560_s25 }
 0xc43   :  { %1585 = dma.smem_to_hbm %s1762_s15, 16, %s1583_s23, [#allocation9]  }
 0xc44   :  { %1755 = dma.done.wait [#allocation7], 16  }
 0xc45   :  { %1756 = vsyncadd [#allocation7], 4294967280 }
 0xc46   :  { %1757 = dma.done.wait [#allocation9], 16  }
 0xc47   :  { %1758 = vsyncadd [#allocation9], 4294967280 }
 0xc48   :  { %1596 = sfence }
 0xc49   :  { %1597 = vsyncpa [#allocation7], 1 }
 0xc4a   :  { %1598 = vsyncpa [#allocation9], 1 }
 0xc4b   :  { %1599 = vsyncmov [#allocation5] }
 0xc4e   :  { %s1600_s26 = vpop.sfrf %1599 }
 0xc4f   :  { %p1708_p0 = scmp.ne.s32.totalorder %s1600_s26, 0 }
 0xc51   :  { %1604 = shalt.err (%p1708_p0)  }

</bundles_post_ra>
